<compile_context>
chip_gen: v7x
topology: tpu7x:2x2x1
jax: 0.10.0
libtpu: 0.0.40
codegen_flags: <defaults>
</compile_context>

<pallas_src>
import functools

import jax
import jax.numpy as jnp
from jax.experimental import pallas as pl
from jax.experimental.pallas import tpu as pltpu

# Logical sizes of the PyTorch model.
D_IN, H1, H2, D_OUT = 784, 500, 300, 10
# Lane-padded output-feature sizes (multiples of 128) used inside the kernel.
H1_P, H2_P, D_OUT_P = 512, 384, 128
_NEG_BIG = -1e30  # mask for padded logit lanes (exp -> 0 under softmax)


def _round_up(n, m):
    return (n + m - 1) // m * m


def _mlp_kernel(x_ref, w1_ref, b1_ref, w2_ref, b2_ref, w3_ref, b3_ref, o_ref):
    # x tile: (tb, 784) f32 straight from HBM; cast to bf16 for the MXU here
    # (no separate wrapper-side pad/cast pass over x).
    x = x_ref[...].astype(jnp.bfloat16)

    # layer1: Linear(784, 500) + Dropout(p=0) [identity] + Tanh
    h1 = jnp.tanh(
        jnp.dot(x, w1_ref[...], preferred_element_type=jnp.float32) + b1_ref[...]
    )

    # layer2: Linear(500, 300) + Dropout(p=0) [identity] + Tanh
    h2 = jnp.tanh(
        jnp.dot(h1.astype(jnp.bfloat16), w2_ref[...],
                preferred_element_type=jnp.float32) + b2_ref[...]
    )

    # layer3: Linear(300, 10) + Softmax(dim=1).  Padded logit lanes carry a
    # -1e30 bias, so after exp() they contribute exactly 0 and the softmax
    # reduces over the real 10 classes only.
    logits = (
        jnp.dot(h2.astype(jnp.bfloat16), w3_ref[...],
                preferred_element_type=jnp.float32) + b3_ref[...]
    )
    m = jnp.max(logits, axis=1, keepdims=True)
    e = jnp.exp(logits - m)
    s = jnp.sum(e, axis=1, keepdims=True)
    o_ref[...] = (e * pl.reciprocal(s, approx=True)).astype(o_ref.dtype)


def prepare_params(params):
    """Pad (in,out)-layout weights to lane-aligned shapes and cast to bf16.

    W1 keeps its real 784-row contraction dim (no K padding).  Biases stay
    f32 (added after the f32 MXU accumulate); the 118 padded output-bias
    lanes are set to -1e30 to mask them out of the softmax.
    """
    w1, b1, w2, b2, w3, b3 = params

    def pad_w(w, rows, cols):
        wp = jnp.zeros((rows, cols), jnp.float32)
        wp = wp.at[: w.shape[0], : w.shape[1]].set(w)
        return wp.astype(jnp.bfloat16)

    def pad_b(bv, cols, fill=0.0):
        bp = jnp.full((1, cols), fill, jnp.float32)
        return bp.at[:, : bv.shape[1]].set(bv)

    return (
        pad_w(w1, D_IN, H1_P), pad_b(b1, H1_P),
        pad_w(w2, H1_P, H2_P), pad_b(b2, H2_P),
        pad_w(w3, H2_P, D_OUT_P), pad_b(b3, D_OUT_P, fill=_NEG_BIG),
    )


def _choose_tile_b(b, tile_b):
    """Static batch-tile choice (shape-time Python).

    - tiny batches: single 16-aligned tile (16 = bf16 sublane packing).
    - batches that would fit in one big tile but are >=512 rows: split into
      two tiles so both v7x TensorCores get work ("parallel" grid axis).
    - otherwise: tile_b (default 512 amortizes per-step pipeline overhead).
    """
    b16 = _round_up(b, 16)
    if b16 <= tile_b:
        if b16 >= 512:
            return _round_up((b16 + 1) // 2, 128)
        return b16
    return tile_b


@functools.partial(jax.jit, static_argnames=("tile_b",))
def mnist_mlp_forward(x, padded_params, tile_b=512):
    """x: (B, 1, 28, 28) or (B, 784) float32. Returns (B, 10) softmax probs."""
    b = x.shape[0]
    x2d = x.reshape(b, -1).astype(jnp.float32)  # matches x.view(B, -1)

    tb = _choose_tile_b(b, tile_b)
    bp = _round_up(b, tb)
    if bp != b:
        # Row-pad only (no feature padding, no dtype cast) — zero rows produce
        # finite softmax outputs and are sliced off below.
        x2d = jnp.zeros((bp, D_IN), jnp.float32).at[:b].set(x2d)

    w1, b1, w2, b2, w3, b3 = padded_params

    flops = 2 * bp * (D_IN * H1_P + H1_P * H2_P + H2_P * D_OUT_P)
    transcendentals = bp * (H1_P + H2_P + D_OUT_P)
    bytes_accessed = (
        bp * D_IN * 4
        + (w1.size + w2.size + w3.size) * 2
        + (b1.size + b2.size + b3.size) * 4
        + bp * D_OUT_P * 2
    )

    out = pl.pallas_call(
        _mlp_kernel,
        out_shape=jax.ShapeDtypeStruct((bp, D_OUT_P), jnp.bfloat16),
        grid=(bp // tb,),
        in_specs=[
            # x: one (tb, 784) f32 batch tile per grid step (pipelined DMA);
            # last dim equals the full array dim, so 784 is a legal block dim.
            pl.BlockSpec((tb, D_IN), lambda i: (i, 0)),
            # weights/biases: same block every step -> VMEM-resident.
            pl.BlockSpec((D_IN, H1_P), lambda i: (0, 0)),
            pl.BlockSpec((1, H1_P), lambda i: (0, 0)),
            pl.BlockSpec((H1_P, H2_P), lambda i: (0, 0)),
            pl.BlockSpec((1, H2_P), lambda i: (0, 0)),
            pl.BlockSpec((H2_P, D_OUT_P), lambda i: (0, 0)),
            pl.BlockSpec((1, D_OUT_P), lambda i: (0, 0)),
        ],
        out_specs=pl.BlockSpec((tb, D_OUT_P), lambda i: (i, 0)),
        compiler_params=pltpu.CompilerParams(
            dimension_semantics=("parallel",),
            # Headroom for tile_b up to ~1024 even on v5e's 16 MiB default
            # scoped limit; 32 MiB is safe on every generation (v7x: 64 MiB).
            vmem_limit_bytes=32 * 1024 * 1024,
        ),
        cost_estimate=pl.CostEstimate(
            flops=flops,
            transcendentals=transcendentals,
            bytes_accessed=bytes_accessed,
        ),
    )(x2d, w1, b1, w2, b2, w3, b3)

    return out[:b, :D_OUT].astype(jnp.float32)


def init_params(key):
    """Init mimicking PyTorch's U(-1/sqrt(fan_in), 1/sqrt(fan_in)).

    Weights stored as (in_features, out_features) — transposed relative to
    nn.Linear.weight — so the kernel computes x @ W.
    """
    dims = [(D_IN, H1), (H1, H2), (H2, D_OUT)]
    keys = jax.random.split(key, 2 * len(dims))
    params = []
    for i, (fan_in, fan_out) in enumerate(dims):
        bound = 1.0 / jnp.sqrt(jnp.float32(fan_in))
        w = jax.random.uniform(
            keys[2 * i], (fan_in, fan_out), jnp.float32, -bound, bound
        )
        bvec = jax.random.uniform(
            keys[2 * i + 1], (1, fan_out), jnp.float32, -bound, bound
        )
        params += [w, bvec]
    return tuple(params)


if __name__ == "__main__":
    key = jax.random.PRNGKey(0)
    k_param, k_x = jax.random.split(key)
    params = init_params(k_param)
    padded_params = prepare_params(params)

    # Small MNIST-shaped batch: (B, 1, 28, 28) NCHW.
    x = jax.random.normal(k_x, (8, 1, 28, 28), dtype=jnp.float32)

    out = mnist_mlp_forward(x, padded_params)
    out = jax.block_until_ready(out)

    # Pure-JAX f32 reference (kernel matmuls are bf16, output stored bf16,
    # approx reciprocal -> loose tolerance).
    w1, b1, w2, b2, w3, b3 = params
    x2d = x.reshape(x.shape[0], -1)
    r1 = jnp.tanh(x2d @ w1 + b1)
    r2 = jnp.tanh(r1 @ w2 + b2)
    ref = jax.nn.softmax(r2 @ w3 + b3, axis=1)

    assert out.shape == (8, 10)
    assert bool(jnp.all(jnp.isfinite(out)))
    assert jnp.allclose(jnp.sum(out, axis=1), 1.0, atol=1e-2)
    assert jnp.allclose(out, ref, atol=5e-2)

    print("KERNEL_OK")
</pallas_src>

<mosaic_0001>
module attributes {stable_mosaic.version = 11 : i64} {
  func.func @_mlp_kernel(%arg0: i32, %arg1: memref<16x784xf32, #tpu.memory_space<vmem>>, %arg2: memref<784x512xbf16, #tpu.memory_space<vmem>>, %arg3: memref<1x512xf32, #tpu.memory_space<vmem>>, %arg4: memref<512x384xbf16, #tpu.memory_space<vmem>>, %arg5: memref<1x384xf32, #tpu.memory_space<vmem>>, %arg6: memref<384x128xbf16, #tpu.memory_space<vmem>>, %arg7: memref<1x128xf32, #tpu.memory_space<vmem>>, %arg8: memref<16x128xbf16, #tpu.memory_space<vmem>>) attributes {dimension_semantics = [#tpu.dimension_semantics<parallel>], iteration_bounds = array<i64: 1>, scalar_prefetch = 0 : i64, scratch_operands = 0 : i64, tpu.core_type = #tpu.core_type<tc>, window_params = [{transform_indices = @transform_0, window_bounds = array<i64: 16, 784>}, {pipeline_mode = #tpu.pipeline_mode<synchronous>, transform_indices = @transform_1, window_bounds = array<i64: 784, 512>}, {pipeline_mode = #tpu.pipeline_mode<synchronous>, transform_indices = @transform_2, window_bounds = array<i64: 1, 512>}, {pipeline_mode = #tpu.pipeline_mode<synchronous>, transform_indices = @transform_3, window_bounds = array<i64: 512, 384>}, {pipeline_mode = #tpu.pipeline_mode<synchronous>, transform_indices = @transform_4, window_bounds = array<i64: 1, 384>}, {pipeline_mode = #tpu.pipeline_mode<synchronous>, transform_indices = @transform_5, window_bounds = array<i64: 384, 128>}, {pipeline_mode = #tpu.pipeline_mode<synchronous>, transform_indices = @transform_6, window_bounds = array<i64: 1, 128>}, {transform_indices = @transform_7, window_bounds = array<i64: 16, 128>}]} {
    %c0 = arith.constant 0 : index
    %c0_0 = arith.constant 0 : index
    %0 = vector.load %arg1[%c0, %c0_0] : memref<16x784xf32, #tpu.memory_space<vmem>>, vector<16x784xf32>
    %1 = arith.truncf %0 : vector<16x784xf32> to vector<16x784xbf16>
    %c0_1 = arith.constant 0 : index
    %c0_2 = arith.constant 0 : index
    %2 = vector.load %arg2[%c0_1, %c0_2] : memref<784x512xbf16, #tpu.memory_space<vmem>>, vector<784x512xbf16>
    %cst = arith.constant dense<0.000000e+00> : vector<16x512xf32>
    %3 = tpu.matmul %1, %2, %cst {dimension_numbers = #tpu.dot_dimension_numbers<[1], [0], [0], [1], [0, 0, 1, 1], [], []>} : vector<16x784xbf16>, vector<784x512xbf16>, vector<16x512xf32> -> vector<16x512xf32>
    %c0_3 = arith.constant 0 : index
    %c0_4 = arith.constant 0 : index
    %4 = vector.load %arg3[%c0_3, %c0_4] : memref<1x512xf32, #tpu.memory_space<vmem>>, vector<1x512xf32>
    %5 = vector.broadcast %4 : vector<1x512xf32> to vector<16x512xf32>
    %6 = arith.addf %3, %5 : vector<16x512xf32>
    %7 = math.tanh %6 : vector<16x512xf32>
    %8 = arith.truncf %7 : vector<16x512xf32> to vector<16x512xbf16>
    %c0_5 = arith.constant 0 : index
    %c0_6 = arith.constant 0 : index
    %9 = vector.load %arg4[%c0_5, %c0_6] : memref<512x384xbf16, #tpu.memory_space<vmem>>, vector<512x384xbf16>
    %cst_7 = arith.constant dense<0.000000e+00> : vector<16x384xf32>
    %10 = tpu.matmul %8, %9, %cst_7 {dimension_numbers = #tpu.dot_dimension_numbers<[1], [0], [0], [1], [0, 0, 1, 1], [], []>} : vector<16x512xbf16>, vector<512x384xbf16>, vector<16x384xf32> -> vector<16x384xf32>
    %c0_8 = arith.constant 0 : index
    %c0_9 = arith.constant 0 : index
    %11 = vector.load %arg5[%c0_8, %c0_9] : memref<1x384xf32, #tpu.memory_space<vmem>>, vector<1x384xf32>
    %12 = vector.broadcast %11 : vector<1x384xf32> to vector<16x384xf32>
    %13 = arith.addf %10, %12 : vector<16x384xf32>
    %14 = math.tanh %13 : vector<16x384xf32>
    %15 = arith.truncf %14 : vector<16x384xf32> to vector<16x384xbf16>
    %c0_10 = arith.constant 0 : index
    %c0_11 = arith.constant 0 : index
    %16 = vector.load %arg6[%c0_10, %c0_11] : memref<384x128xbf16, #tpu.memory_space<vmem>>, vector<384x128xbf16>
    %cst_12 = arith.constant dense<0.000000e+00> : vector<16x128xf32>
    %17 = tpu.matmul %15, %16, %cst_12 {dimension_numbers = #tpu.dot_dimension_numbers<[1], [0], [0], [1], [0, 0, 1, 1], [], []>} : vector<16x384xbf16>, vector<384x128xbf16>, vector<16x128xf32> -> vector<16x128xf32>
    %c0_13 = arith.constant 0 : index
    %c0_14 = arith.constant 0 : index
    %18 = vector.load %arg7[%c0_13, %c0_14] : memref<1x128xf32, #tpu.memory_space<vmem>>, vector<1x128xf32>
    %19 = vector.broadcast %18 : vector<1x128xf32> to vector<16x128xf32>
    %20 = arith.addf %17, %19 : vector<16x128xf32>
    %cst_15 = arith.constant dense<0xFF800000> : vector<16xf32>
    %21 = vector.multi_reduction <maximumf>, %20, %cst_15 [1] : vector<16x128xf32> to vector<16xf32>
    %22 = vector.shape_cast %21 : vector<16xf32> to vector<16x1xf32>
    %23 = vector.broadcast %22 : vector<16x1xf32> to vector<16x128xf32>
    %24 = arith.subf %20, %23 : vector<16x128xf32>
    %25 = math.exp %24 : vector<16x128xf32>
    %cst_16 = arith.constant dense<0.000000e+00> : vector<16xf32>
    %26 = vector.multi_reduction <add>, %25, %cst_16 [1] : vector<16x128xf32> to vector<16xf32>
    %27 = vector.shape_cast %26 : vector<16xf32> to vector<16x1xf32>
    %28 = tpu.reciprocal %27 {approx = true} : vector<16x1xf32> -> vector<16x1xf32>
    %29 = vector.broadcast %28 : vector<16x1xf32> to vector<16x128xf32>
    %30 = arith.mulf %25, %29 : vector<16x128xf32>
    %31 = arith.truncf %30 : vector<16x128xf32> to vector<16x128xbf16>
    %c0_17 = arith.constant 0 : index
    %c0_18 = arith.constant 0 : index
    %32 = vector.load %arg8[%c0_17, %c0_18] : memref<16x128xbf16, #tpu.memory_space<vmem>>, vector<16x128xbf16>
    tpu.vector_store %arg8[%c0_17, %c0_18], %31 {strides = array<i32>} : memref<16x128xbf16, #tpu.memory_space<vmem>>, vector<16x128xbf16>,
    return
  }
  func.func @transform_0(%arg0: i32) -> (i32, i32) {
    %c0_i32 = arith.constant 0 : i32
    %c0_i32_0 = arith.constant 0 : i32
    return %arg0, %c0_i32 : i32, i32
  }
  func.func @transform_1(%arg0: i32) -> (i32, i32) {
    %c0_i32 = arith.constant 0 : i32
    %c0_i32_0 = arith.constant 0 : i32
    %c0_i32_1 = arith.constant 0 : i32
    return %c0_i32, %c0_i32_0 : i32, i32
  }
  func.func @transform_2(%arg0: i32) -> (i32, i32) {
    %c0_i32 = arith.constant 0 : i32
    %c0_i32_0 = arith.constant 0 : i32
    %c0_i32_1 = arith.constant 0 : i32
    return %c0_i32, %c0_i32_0 : i32, i32
  }
  func.func @transform_3(%arg0: i32) -> (i32, i32) {
    %c0_i32 = arith.constant 0 : i32
    %c0_i32_0 = arith.constant 0 : i32
    %c0_i32_1 = arith.constant 0 : i32
    return %c0_i32, %c0_i32_0 : i32, i32
  }
  func.func @transform_4(%arg0: i32) -> (i32, i32) {
    %c0_i32 = arith.constant 0 : i32
    %c0_i32_0 = arith.constant 0 : i32
    %c0_i32_1 = arith.constant 0 : i32
    return %c0_i32, %c0_i32_0 : i32, i32
  }
  func.func @transform_5(%arg0: i32) -> (i32, i32) {
    %c0_i32 = arith.constant 0 : i32
    %c0_i32_0 = arith.constant 0 : i32
    %c0_i32_1 = arith.constant 0 : i32
    return %c0_i32, %c0_i32_0 : i32, i32
  }
  func.func @transform_6(%arg0: i32) -> (i32, i32) {
    %c0_i32 = arith.constant 0 : i32
    %c0_i32_0 = arith.constant 0 : i32
    %c0_i32_1 = arith.constant 0 : i32
    return %c0_i32, %c0_i32_0 : i32, i32
  }
  func.func @transform_7(%arg0: i32) -> (i32, i32) {
    %c0_i32 = arith.constant 0 : i32
    %c0_i32_0 = arith.constant 0 : i32
    return %arg0, %c0_i32 : i32, i32
  }
}

</mosaic_0001>

<bundles_post_ra>
// kernel: mnist_mlp_forward.1
= control target key start
LH: loop header
LB: loop body
LE: loop exit
PB: predicated region body
PF: predicated region fallthrough
CT: control target
= control target key end

     0   :  { %12 = vsyncpa [#allocation3], 0  ;;  %s3743_s24 = smov [#allocation2]   ;;  %s4246_s0 = inlined_call_operand.vmem [shape: f32[16,784], index: 0, kind: input, shape index: {}]   ;;  %s4247_s1 = inlined_call_operand.hbm [shape: bf16[784,512], index: 1, kind: input, shape index: {}]   ;;  %s4248_s2 = inlined_call_operand.vmem [shape: f32[1,512], index: 2, kind: input, shape index: {}]   ;;  %s4249_s3 = inlined_call_operand.vmem [shape: bf16[512,384], index: 3, kind: input, shape index: {}]   ;;  %s4250_s4 = inlined_call_operand.vmem [shape: f32[1,384], index: 4, kind: input, shape index: {}]   ;;  %s4251_s5 = inlined_call_operand.vmem [shape: bf16[384,128], index: 5, kind: input, shape index: {}]   ;;  %s4252_s6 = inlined_call_operand.vmem [shape: f32[1,128], index: 6, kind: input, shape index: {}]   ;;  %s4253_s7 = inlined_call_operand.vmem [shape: bf16[16,128], index: 7, kind: output, shape index: {}]  }
   0x1   :  { %s20_s25 = sshll.u32 %s3743_s24, 4  ;;  %s3719_s28 = scalar_lea.hbm %s4247_s1, 25088  ;;  %s21_s25 = int_to_ptr.vmem [resolvable:$true] %s20_s25 }
   0x2   :  { %p3720_p0 = scmp.ne.s32.totalorder %s4247_s1, %s3719_s28  ;;  %p3723_p1 = scmp.lt.u32.totalorder %s3719_s28, %s4247_s1 }
   0x4   :  { %p3725_p2 = pnand %p3723_p1, %p3720_p0 }
   0x6   :  { %3728 = shalt.err (!%p3725_p2)
}
   0x7   :  { %s3729_s10 = scalar_lea.vmem %s21_s25, 25088  ;;  %p3734_p4 = scmp.lt.s32.totalorder %s21_s25, %s21_s25 }
   0x8   :  { %p3730_p3 = scmp.ne.s32.totalorder %s21_s25, %s3729_s10  ;;  %p3735_p5 = scmp.lt.s32.totalorder %s3729_s10, %s3729_s10 }
   0xa   :  { %p3736_p6 = por %p3735_p5, %p3734_p4 }
   0xc   :  { %p3737_p7 = pnand %p3736_p6, %p3730_p3 }
   0xe   :  { %3740 = shalt.err (!%p3737_p7)
}
   0xf   :  { %s3744_s11 = smov 256   ;;  %s3745_s12 = smov 16  }
  0x10   :  { %26 = dma.hbm_to_vmem [thread:$0]  %s4247_s1, 25088, %s21_s25, [#allocation3], %s3744_s11, %s3744_s11, %s3745_s12  }
  0x11   :  { %3741 = dma.done.wait [#allocation3], 25088  }
  0x12   :  { %3742 = vsyncadd [#allocation3], 4294942208  ;;  %v3237_v0 = vld [vmem:[#allocation2 + $0x4] ss:$16 sps:$4 sm:$0xff]   ;;  %v3239_v1 = vld [vmem:[#allocation2 + $0xc] ss:$16 sps:$4 sm:$0xff]  }
  0x13   :  { %1264 = vmatprep.subr.bf16.mxu0 %v3237_v0  ;;  %v3241_v2 = vld [vmem:[#allocation2] ss:$16 sps:$4 sm:$0xff]   ;;  %v3242_v3 = vld [vmem:[#allocation2 + $0x8] ss:$16 sps:$4 sm:$0xff]   ;;  %1436 = vmatprep.subr.bf16.mxu1 %v3239_v1  ;;  %v3243_v4 = vld [vmem:[#allocation2 + $0x24] ss:$16 sps:$4 sm:$0xff]  }
  0x14   :  { %1265 = vmatpush1.bf16.msra.mxu0 %v3241_v2  ;;  %1437 = vmatpush1.bf16.msra.mxu1 %v3242_v3  ;;  %v3245_v5 = vld [vmem:[#allocation2 + $0x2c] ss:$16 sps:$4 sm:$0xff]   ;;  %v3247_v6 = vld [vmem:[#allocation2 + $0x20] ss:$16 sps:$4 sm:$0xff]   ;;  %v3248_v7 = vld [vmem:[#allocation2 + $0x28] ss:$16 sps:$4 sm:$0xff]  }
  0x15   :  { %1266 = vmatprep.subr.bf16.mxu0 %v3243_v4  ;;  %1438 = vmatprep.subr.bf16.mxu1 %v3245_v5  ;;  %v3249_v8 = vld [vmem:[#allocation2 + $0x44] ss:$16 sps:$4 sm:$0xff]   ;;  %v3251_v9 = vld [vmem:[#allocation2 + $0x4c] ss:$16 sps:$4 sm:$0xff]   ;;  %v3253_v10 = vld [vmem:[#allocation2 + $0x40] ss:$16 sps:$4 sm:$0xff]  }
  0x16   :  { %v3254_v11 = vld [vmem:[#allocation2 + $0x48] ss:$16 sps:$4 sm:$0xff]   ;;  %v3255_v12 = vld [vmem:[#allocation2 + $0x64] ss:$16 sps:$4 sm:$0xff]   ;;  %v3257_v13 = vld [vmem:[#allocation2 + $0x6c] ss:$16 sps:$4 sm:$0xff]  }
  0x17   :  { %v3259_v14 = vld [vmem:[#allocation2 + $0x60] ss:$16 sps:$4 sm:$0xff]   ;;  %v3260_v15 = vld [vmem:[#allocation2 + $0x68] ss:$16 sps:$4 sm:$0xff]   ;;  %v3261_v16 = vld [vmem:[#allocation2 + $0x84] ss:$16 sps:$4 sm:$0xff]  }
  0x18   :  { %1267 = vmatpush1.bf16.msra.mxu0 %v3247_v6  ;;  %1439 = vmatpush1.bf16.msra.mxu1 %v3248_v7  ;;  %v3263_v17 = vld [vmem:[#allocation2 + $0x8c] ss:$16 sps:$4 sm:$0xff]   ;;  %v3265_v18 = vld [vmem:[#allocation2 + $0x80] ss:$16 sps:$4 sm:$0xff]   ;;  %v3266_v19 = vld [vmem:[#allocation2 + $0x88] ss:$16 sps:$4 sm:$0xff]  }
  0x19   :  { %1268 = vmatprep.subr.bf16.mxu0 %v3249_v8  ;;  %1440 = vmatprep.subr.bf16.mxu1 %v3251_v9  ;;  %v3267_v20 = vld [vmem:[#allocation2 + $0xa4] ss:$16 sps:$4 sm:$0xff]   ;;  %v3269_v21 = vld [vmem:[#allocation2 + $0xac] ss:$16 sps:$4 sm:$0xff]   ;;  %v3271_v22 = vld [vmem:[#allocation2 + $0xa0] ss:$16 sps:$4 sm:$0xff]  }
  0x1a   :  { %v3272_v23 = vld [vmem:[#allocation2 + $0xa8] ss:$16 sps:$4 sm:$0xff]   ;;  %v3273_v24 = vld [vmem:[#allocation2 + $0xc4] ss:$16 sps:$4 sm:$0xff]   ;;  %v3275_v25 = vld [vmem:[#allocation2 + $0xcc] ss:$16 sps:$4 sm:$0xff]  }
  0x1b   :  { %v3277_v26 = vld [vmem:[#allocation2 + $0xc0] ss:$16 sps:$4 sm:$0xff]   ;;  %v3278_v27 = vld [vmem:[#allocation2 + $0xc8] ss:$16 sps:$4 sm:$0xff]   ;;  %v3279_v28 = vld [vmem:[#allocation2 + $0xe4] ss:$16 sps:$4 sm:$0xff]  }
  0x1c   :  { %1269 = vmatpush1.bf16.msra.mxu0 %v3253_v10  ;;  %1441 = vmatpush1.bf16.msra.mxu1 %v3254_v11  ;;  %v3281_v29 = vld [vmem:[#allocation2 + $0xec] ss:$16 sps:$4 sm:$0xff]   ;;  %v3283_v30 = vld [vmem:[#allocation2 + $0xe0] ss:$16 sps:$4 sm:$0xff]   ;;  %v3284_v31 = vld [vmem:[#allocation2 + $0xe8] ss:$16 sps:$4 sm:$0xff]  }
  0x1d   :  { %1270 = vmatprep.subr.bf16.mxu0 %v3255_v12  ;;  %1442 = vmatprep.subr.bf16.mxu1 %v3257_v13  ;;  %v3285_v32 = vld [vmem:[#allocation2 + $0x104] ss:$16 sps:$4 sm:$0xff]   ;;  %v3287_v33 = vld [vmem:[#allocation2 + $0x10c] ss:$16 sps:$4 sm:$0xff]   ;;  %v3289_v34 = vld [vmem:[#allocation2 + $0x100] ss:$16 sps:$4 sm:$0xff]  }
  0x1e   :  { %v3290_v35 = vld [vmem:[#allocation2 + $0x108] ss:$16 sps:$4 sm:$0xff]   ;;  %v3291_v36 = vld [vmem:[#allocation2 + $0x124] ss:$16 sps:$4 sm:$0xff]   ;;  %v3293_v37 = vld [vmem:[#allocation2 + $0x12c] ss:$16 sps:$4 sm:$0xff]  }
  0x1f   :  { %v3295_v38 = vld [vmem:[#allocation2 + $0x120] ss:$16 sps:$4 sm:$0xff]   ;;  %v3296_v39 = vld [vmem:[#allocation2 + $0x128] ss:$16 sps:$4 sm:$0xff]   ;;  %v3297_v40 = vld [vmem:[#allocation2 + $0x144] ss:$16 sps:$4 sm:$0xff]  }
  0x20   :  { %1271 = vmatpush1.bf16.msra.mxu0 %v3259_v14  ;;  %1443 = vmatpush1.bf16.msra.mxu1 %v3260_v15  ;;  %v3299_v41 = vld [vmem:[#allocation2 + $0x14c] ss:$16 sps:$4 sm:$0xff]   ;;  %v3301_v42 = vld [vmem:[#allocation2 + $0x140] ss:$16 sps:$4 sm:$0xff]   ;;  %v3302_v43 = vld [vmem:[#allocation2 + $0x148] ss:$16 sps:$4 sm:$0xff]  }
  0x21   :  { %1272 = vmatprep.subr.bf16.mxu0 %v3261_v16  ;;  %1444 = vmatprep.subr.bf16.mxu1 %v3263_v17  ;;  %v3303_v44 = vld [vmem:[#allocation2 + $0x164] ss:$16 sps:$4 sm:$0xff]   ;;  %v3305_v45 = vld [vmem:[#allocation2 + $0x16c] ss:$16 sps:$4 sm:$0xff]   ;;  %v3307_v48 = vld [vmem:[#allocation2 + $0x160] ss:$16 sps:$4 sm:$0xff]  }
  0x22   :  { %v42_v46 = vld [vmem:[%s4246_s0 + $0x8] sm:$0xff]  ;;  %v49_v47 = vld [vmem:[%s4246_s0 + $0x40] sm:$0xff]  ;;  %v48_v5 = vld [vmem:[%s4246_s0 + $0x38] sm:$0xff]  ;;  %vm1260_vm0 = vcmask 130048   ;;  %vm3748_vm1 = vmmov 0  }
  0x23   :  { %v3308_v49 = vld [vmem:[#allocation2 + $0x168] ss:$16 sps:$4 sm:$0xff]   ;;  %v56_v50 = vpack.c.bf16 %v49_v47, %v42_v46  ;;  %v3309_v51 = vld [vmem:[#allocation2 + $0x184] ss:$16 sps:$4 sm:$0xff]   ;;  %v3311_v52 = vld [vmem:[#allocation2 + $0x18c] ss:$16 sps:$4 sm:$0xff]  }
  0x24   :  { %1273 = vmatpush1.bf16.msra.mxu0 %v3265_v18  ;;  %1445 = vmatpush1.bf16.msra.mxu1 %v3266_v19  ;;  %v3313_v53 = vld [vmem:[#allocation2 + $0x180] ss:$16 sps:$4 sm:$0xff]   ;;  %v3314_v54 = vld [vmem:[#allocation2 + $0x188] ss:$16 sps:$4 sm:$0xff]   ;;  %v3315_v55 = vld [vmem:[#allocation2 + $0x1a4] ss:$16 sps:$4 sm:$0xff]  }
  0x25   :  { %1274 = vmatprep.subr.bf16.mxu0 %v3267_v20  ;;  %1446 = vmatprep.subr.bf16.mxu1 %v3269_v21  ;;  %v3317_v56 = vld [vmem:[#allocation2 + $0x1ac] ss:$16 sps:$4 sm:$0xff]   ;;  %v3319_v57 = vld [vmem:[#allocation2 + $0x1a0] ss:$16 sps:$4 sm:$0xff]   ;;  %v3320_v58 = vld [vmem:[#allocation2 + $0x1a8] ss:$16 sps:$4 sm:$0xff]  }
  0x26   :  { %1296 = vmatprep.mubr.bf16.mxu0 %v56_v50  ;;  %1468 = vmatprep.mubr.bf16.mxu1 %v56_v50  ;;  %v3321_v59 = vld [vmem:[#allocation2 + $0x1c4] ss:$16 sps:$4 sm:$0xff]   ;;  %v3323_v60 = vld [vmem:[#allocation2 + $0x1cc] ss:$16 sps:$4 sm:$0xff]   ;;  %v3325_v61 = vld [vmem:[#allocation2 + $0x1c0] ss:$16 sps:$4 sm:$0xff]  }
  0x27   :  { %v3326_v62 = vld [vmem:[#allocation2 + $0x1c8] ss:$16 sps:$4 sm:$0xff]   ;;  %v3327_v63 = vld [vmem:[#allocation2 + $0x1e4] ss:$16 sps:$4 sm:$0xff]   ;;  %v3329_v0 = vld [vmem:[#allocation2 + $0x1ec] ss:$16 sps:$4 sm:$0xff]  }
  0x28   :  { %1275 = vmatpush1.bf16.msra.mxu0 %v3271_v22  ;;  %1447 = vmatpush1.bf16.msra.mxu1 %v3272_v23  ;;  %v3331_v1 = vld [vmem:[#allocation2 + $0x1e0] ss:$16 sps:$4 sm:$0xff]   ;;  %v3332_v2 = vld [vmem:[#allocation2 + $0x1e8] ss:$16 sps:$4 sm:$0xff]   ;;  %v3335_v3 = vld [vmem:[#allocation2 + $0x204] ss:$16 sps:$4 sm:$0xff]  }
  0x29   :  { %1276 = vmatprep.subr.bf16.mxu0 %v3273_v24  ;;  %1448 = vmatprep.subr.bf16.mxu1 %v3275_v25  ;;  %v41_v4 = vld [vmem:[%s4246_s0] sm:$0xff]  ;;  %v3338_v6 = vld [vmem:[#allocation2 + $0x20c] ss:$16 sps:$4 sm:$0xff]   ;;  %v3336_v8 = vld [vmem:[#allocation2 + $0x208] ss:$16 sps:$4 sm:$0xff]  }
  0x2a   :  { %v3333_v7 = vld [vmem:[#allocation2 + $0x200] ss:$16 sps:$4 sm:$0xff]   ;;  %v55_v9 = vpack.c.bf16 %v48_v5, %v41_v4  ;;  %v3341_v10 = vld [vmem:[#allocation2 + $0x224] ss:$16 sps:$4 sm:$0xff]   ;;  %v3344_v11 = vld [vmem:[#allocation2 + $0x22c] ss:$16 sps:$4 sm:$0xff]  }
  0x2b   :  { %v3339_v12 = vld [vmem:[#allocation2 + $0x220] ss:$16 sps:$4 sm:$0xff]   ;;  %v3342_v13 = vld [vmem:[#allocation2 + $0x228] ss:$16 sps:$4 sm:$0xff]   ;;  %v3347_v14 = vld [vmem:[#allocation2 + $0x244] ss:$16 sps:$4 sm:$0xff]  }
  0x2c   :  { %1277 = vmatpush1.bf16.msra.mxu0 %v3277_v26  ;;  %1449 = vmatpush1.bf16.msra.mxu1 %v3278_v27  ;;  %v3350_v15 = vld [vmem:[#allocation2 + $0x24c] ss:$16 sps:$4 sm:$0xff]   ;;  %v3345_v16 = vld [vmem:[#allocation2 + $0x240] ss:$16 sps:$4 sm:$0xff]   ;;  %v3348_v17 = vld [vmem:[#allocation2 + $0x248] ss:$16 sps:$4 sm:$0xff]  }
  0x2d   :  { %1278 = vmatprep.subr.bf16.mxu0 %v3279_v28  ;;  %1450 = vmatprep.subr.bf16.mxu1 %v3281_v29  ;;  %v3353_v18 = vld [vmem:[#allocation2 + $0x264] ss:$16 sps:$4 sm:$0xff]   ;;  %v3356_v19 = vld [vmem:[#allocation2 + $0x26c] ss:$16 sps:$4 sm:$0xff]   ;;  %v3351_v20 = vld [vmem:[#allocation2 + $0x260] ss:$16 sps:$4 sm:$0xff]  }
  0x2e   :  { %v3354_v21 = vld [vmem:[#allocation2 + $0x268] ss:$16 sps:$4 sm:$0xff]   ;;  %v3359_v22 = vld [vmem:[#allocation2 + $0x284] ss:$16 sps:$4 sm:$0xff]   ;;  %v3362_v23 = vld [vmem:[#allocation2 + $0x28c] ss:$16 sps:$4 sm:$0xff]  }
  0x2f   :  { %v3357_v24 = vld [vmem:[#allocation2 + $0x280] ss:$16 sps:$4 sm:$0xff]   ;;  %v3360_v25 = vld [vmem:[#allocation2 + $0x288] ss:$16 sps:$4 sm:$0xff]   ;;  %v3365_v26 = vld [vmem:[#allocation2 + $0x2a4] ss:$16 sps:$4 sm:$0xff]  }
  0x30   :  { %1279 = vmatpush1.bf16.msra.mxu0 %v3283_v30  ;;  %1451 = vmatpush1.bf16.msra.mxu1 %v3284_v31  ;;  %v3368_v27 = vld [vmem:[#allocation2 + $0x2ac] ss:$16 sps:$4 sm:$0xff]   ;;  %v3363_v28 = vld [vmem:[#allocation2 + $0x2a0] ss:$16 sps:$4 sm:$0xff]   ;;  %v3366_v29 = vld [vmem:[#allocation2 + $0x2a8] ss:$16 sps:$4 sm:$0xff]  }
  0x31   :  { %1280 = vmatprep.subr.bf16.mxu0 %v3285_v32  ;;  %1452 = vmatprep.subr.bf16.mxu1 %v3287_v33  ;;  %v3371_v30 = vld [vmem:[#allocation2 + $0x2c4] ss:$16 sps:$4 sm:$0xff]   ;;  %v3374_v31 = vld [vmem:[#allocation2 + $0x2cc] ss:$16 sps:$4 sm:$0xff]   ;;  %v3387_v47 = vld [vmem:[#allocation2 + $0x320] ss:$16 sps:$4 sm:$0xff]  }
  0x32   :  { %v44_v32 = vld [vmem:[%s4246_s0 + $0x18] sm:$0xff]  ;;  %v51_v33 = vld [vmem:[%s4246_s0 + $0x50] sm:$0xff] }
  0x33   :  { %v3392_v46 = vld [vmem:[#allocation2 + $0x32c] ss:$16 sps:$4 sm:$0xff]   ;;  %v3420_v4 = vld [vmem:[#allocation2 + $0x3c8] ss:$16 sps:$4 sm:$0xff]   ;;  %v3425_v5 = vld [vmem:[#allocation2 + $0x3e4] ss:$16 sps:$4 sm:$0xff]  }
  0x34   :  { %1281 = vmatpush1.bf16.msra.mxu0 %v3289_v34  ;;  %1453 = vmatpush1.bf16.msra.mxu1 %v3290_v35  ;;  %v3369_v34 = vld [vmem:[#allocation2 + $0x2c0] ss:$16 sps:$4 sm:$0xff]   ;;  %v3372_v35 = vld [vmem:[#allocation2 + $0x2c8] ss:$16 sps:$4 sm:$0xff]   ;;  %v3398_v50 = vld [vmem:[#allocation2 + $0x34c] ss:$16 sps:$4 sm:$0xff]  }
  0x35   :  { %1282 = vmatprep.subr.bf16.mxu0 %v3291_v36  ;;  %1454 = vmatprep.subr.bf16.mxu1 %v3293_v37  ;;  %v58_v36 = vpack.c.bf16 %v51_v33, %v44_v32  ;;  %v3377_v37 = vld [vmem:[#allocation2 + $0x2e4] ss:$16 sps:$4 sm:$0xff]   ;;  %v3458_v32 = vld [vmem:[#allocation2 + $0x48c] ss:$16 sps:$4 sm:$0xff]   ;;  %v3453_v33 = vld [vmem:[#allocation2 + $0x480] ss:$16 sps:$4 sm:$0xff]  }
  0x38   :  { %1283 = vmatpush1.bf16.msra.mxu0 %v3295_v38  ;;  %1455 = vmatpush1.bf16.msra.mxu1 %v3296_v39  ;;  %v3380_v38 = vld [vmem:[#allocation2 + $0x2ec] ss:$16 sps:$4 sm:$0xff]   ;;  %v3375_v39 = vld [vmem:[#allocation2 + $0x2e0] ss:$16 sps:$4 sm:$0xff]  }
  0x39   :  { %1284 = vmatprep.subr.bf16.mxu0 %v3297_v40  ;;  %1456 = vmatprep.subr.bf16.mxu1 %v3299_v41  ;;  %v3378_v40 = vld [vmem:[#allocation2 + $0x2e8] ss:$16 sps:$4 sm:$0xff]   ;;  %v3383_v41 = vld [vmem:[#allocation2 + $0x304] ss:$16 sps:$4 sm:$0xff]  }
  0x3c   :  { %1285 = vmatpush1.bf16.msra.mxu0 %v3301_v42  ;;  %1457 = vmatpush1.bf16.msra.mxu1 %v3302_v43  ;;  %v3386_v42 = vld [vmem:[#allocation2 + $0x30c] ss:$16 sps:$4 sm:$0xff]   ;;  %v3381_v43 = vld [vmem:[#allocation2 + $0x300] ss:$16 sps:$4 sm:$0xff]  }
  0x3d   :  { %1286 = vmatprep.subr.bf16.mxu0 %v3303_v44  ;;  %1458 = vmatprep.subr.bf16.mxu1 %v3305_v45  ;;  %v3384_v44 = vld [vmem:[#allocation2 + $0x308] ss:$16 sps:$4 sm:$0xff]   ;;  %v3389_v45 = vld [vmem:[#allocation2 + $0x324] ss:$16 sps:$4 sm:$0xff]  }
  0x40   :  { %1287 = vmatpush1.bf16.msra.mxu0 %v3307_v48  ;;  %1459 = vmatpush1.bf16.msra.mxu1 %v3308_v49  ;;  %v3390_v48 = vld [vmem:[#allocation2 + $0x328] ss:$16 sps:$4 sm:$0xff]   ;;  %v3395_v49 = vld [vmem:[#allocation2 + $0x344] ss:$16 sps:$4 sm:$0xff]  }
  0x41   :  { %1288 = vmatprep.subr.bf16.mxu0 %v3309_v51  ;;  %1460 = vmatprep.subr.bf16.mxu1 %v3311_v52  ;;  %v3393_v51 = vld [vmem:[#allocation2 + $0x340] ss:$16 sps:$4 sm:$0xff]   ;;  %v3396_v52 = vld [vmem:[#allocation2 + $0x348] ss:$16 sps:$4 sm:$0xff]  }
  0x44   :  { %1289 = vmatpush1.bf16.msra.mxu0 %v3313_v53  ;;  %1461 = vmatpush1.bf16.msra.mxu1 %v3314_v54  ;;  %v3401_v53 = vld [vmem:[#allocation2 + $0x364] ss:$16 sps:$4 sm:$0xff]   ;;  %v3404_v54 = vld [vmem:[#allocation2 + $0x36c] ss:$16 sps:$4 sm:$0xff]  }
  0x45   :  { %1290 = vmatprep.subr.bf16.mxu0 %v3315_v55  ;;  %1462 = vmatprep.subr.bf16.mxu1 %v3317_v56  ;;  %v3399_v55 = vld [vmem:[#allocation2 + $0x360] ss:$16 sps:$4 sm:$0xff]   ;;  %v3402_v56 = vld [vmem:[#allocation2 + $0x368] ss:$16 sps:$4 sm:$0xff]  }
  0x48   :  { %1291 = vmatpush1.bf16.msra.mxu0 %v3319_v57  ;;  %1463 = vmatpush1.bf16.msra.mxu1 %v3320_v58  ;;  %v3407_v57 = vld [vmem:[#allocation2 + $0x384] ss:$16 sps:$4 sm:$0xff]   ;;  %v3410_v58 = vld [vmem:[#allocation2 + $0x38c] ss:$16 sps:$4 sm:$0xff]  }
  0x49   :  { %1292 = vmatprep.subr.bf16.mxu0 %v3321_v59  ;;  %1464 = vmatprep.subr.bf16.mxu1 %v3323_v60  ;;  %v3405_v59 = vld [vmem:[#allocation2 + $0x380] ss:$16 sps:$4 sm:$0xff]   ;;  %v3408_v60 = vld [vmem:[#allocation2 + $0x388] ss:$16 sps:$4 sm:$0xff]  }
  0x4c   :  { %1293 = vmatpush1.bf16.msra.mxu0 %v3325_v61  ;;  %1465 = vmatpush1.bf16.msra.mxu1 %v3326_v62  ;;  %v3413_v61 = vld [vmem:[#allocation2 + $0x3a4] ss:$16 sps:$4 sm:$0xff]   ;;  %v3416_v62 = vld [vmem:[#allocation2 + $0x3ac] ss:$16 sps:$4 sm:$0xff]  }
  0x4d   :  { %1294 = vmatprep.subr.bf16.mxu0 %v3327_v63  ;;  %1466 = vmatprep.subr.bf16.mxu1 %v3329_v0  ;;  %v3411_v63 = vld [vmem:[#allocation2 + $0x3a0] ss:$16 sps:$4 sm:$0xff]   ;;  %v3414_v0 = vld [vmem:[#allocation2 + $0x3a8] ss:$16 sps:$4 sm:$0xff]  }
  0x50   :  { %1295 = vmatpush1.bf16.msra.mxu0 %v3331_v1  ;;  %1467 = vmatpush1.bf16.msra.mxu1 %v3332_v2  ;;  %v3419_v1 = vld [vmem:[#allocation2 + $0x3c4] ss:$16 sps:$4 sm:$0xff]   ;;  %v3422_v2 = vld [vmem:[#allocation2 + $0x3cc] ss:$16 sps:$4 sm:$0xff]  }
  0x51   :  { %1307 = vmatprep.subr.bf16.mxu0 %v3335_v3  ;;  %1479 = vmatprep.subr.bf16.mxu1 %v3338_v6  ;;  %v3417_v3 = vld [vmem:[#allocation2 + $0x3c0] ss:$16 sps:$4 sm:$0xff]   ;;  %v3428_v6 = vld [vmem:[#allocation2 + $0x3ec] ss:$16 sps:$4 sm:$0xff]  }
  0x53   :  { %1297 = vmatmul.mubr.bf16.vlgmr.msra.gmra.mrb[0].mxu0 %v55_v9  ;;  %1469 = vmatmul.mubr.bf16.vlgmr.msra.gmra.mrb[0].mxu1 %v55_v9  ;;  %v3431_v9 = vld [vmem:[#allocation2 + $0x404] ss:$16 sps:$4 sm:$0xff]  }
  0x54   :  { %1308 = vmatpush1.bf16.msra.mxu0 %v3333_v7  ;;  %1480 = vmatpush1.bf16.msra.mxu1 %v3336_v8  ;;  %v3423_v7 = vld [vmem:[#allocation2 + $0x3e0] ss:$16 sps:$4 sm:$0xff]   ;;  %v3426_v8 = vld [vmem:[#allocation2 + $0x3e8] ss:$16 sps:$4 sm:$0xff]  }
  0x55   :  { %1309 = vmatprep.subr.bf16.mxu0 %v3341_v10  ;;  %1481 = vmatprep.subr.bf16.mxu1 %v3344_v11  ;;  %v43_v10 = vld [vmem:[%s4246_s0 + $0x10] sm:$0xff]  ;;  %v50_v11 = vld [vmem:[%s4246_s0 + $0x48] sm:$0xff] }
  0x56   :  { %1339 = vmatprep.mubr.bf16.mxu0 %v58_v36  ;;  %1511 = vmatprep.mubr.bf16.mxu1 %v58_v36  ;;  %v3464_v36 = vld [vmem:[#allocation2 + $0x4ac] ss:$16 sps:$4 sm:$0xff]  }
  0x58   :  { %1310 = vmatpush1.bf16.msra.mxu0 %v3339_v12  ;;  %1482 = vmatpush1.bf16.msra.mxu1 %v3342_v13  ;;  %v3434_v12 = vld [vmem:[#allocation2 + $0x40c] ss:$16 sps:$4 sm:$0xff]   ;;  %v3429_v13 = vld [vmem:[#allocation2 + $0x400] ss:$16 sps:$4 sm:$0xff]  }
  0x59   :  { %1311 = vmatprep.subr.bf16.mxu0 %v3347_v14  ;;  %1483 = vmatprep.subr.bf16.mxu1 %v3350_v15  ;;  %v3432_v14 = vld [vmem:[#allocation2 + $0x408] ss:$16 sps:$4 sm:$0xff]   ;;  %v57_v15 = vpack.c.bf16 %v50_v11, %v43_v10  ;;  %v3521_v11 = vld [vmem:[#allocation2 + $0x5e4] ss:$16 sps:$4 sm:$0xff]  }
  0x5a   :  { %v3516_v10 = vld [vmem:[#allocation2 + $0x5c8] ss:$16 sps:$4 sm:$0xff]  }
  0x5c   :  { %1312 = vmatpush1.bf16.msra.mxu0 %v3345_v16  ;;  %1484 = vmatpush1.bf16.msra.mxu1 %v3348_v17  ;;  %v3437_v16 = vld [vmem:[#allocation2 + $0x424] ss:$16 sps:$4 sm:$0xff]   ;;  %v3440_v17 = vld [vmem:[#allocation2 + $0x42c] ss:$16 sps:$4 sm:$0xff]  }
  0x5d   :  { %1313 = vmatprep.subr.bf16.mxu0 %v3353_v18  ;;  %1485 = vmatprep.subr.bf16.mxu1 %v3356_v19  ;;  %v46_v18 = vld [vmem:[%s4246_s0 + $0x28] sm:$0xff]  ;;  %v3435_v19 = vld [vmem:[#allocation2 + $0x420] ss:$16 sps:$4 sm:$0xff]  }
  0x60   :  { %1314 = vmatpush1.bf16.msra.mxu0 %v3351_v20  ;;  %1486 = vmatpush1.bf16.msra.mxu1 %v3354_v21  ;;  %v3438_v20 = vld [vmem:[#allocation2 + $0x428] ss:$16 sps:$4 sm:$0xff]   ;;  %v53_v21 = vld [vmem:[%s4246_s0 + $0x60] sm:$0xff] }
  0x61   :  { %1315 = vmatprep.subr.bf16.mxu0 %v3359_v22  ;;  %1487 = vmatprep.subr.bf16.mxu1 %v3362_v23  ;;  %v3443_v22 = vld [vmem:[#allocation2 + $0x444] ss:$16 sps:$4 sm:$0xff]   ;;  %v60_v23 = vpack.c.bf16 %v53_v21, %v46_v18  ;;  %v3530_v18 = vld [vmem:[#allocation2 + $0x60c] ss:$16 sps:$4 sm:$0xff]  }
  0x64   :  { %1316 = vmatpush1.bf16.msra.mxu0 %v3357_v24  ;;  %1488 = vmatpush1.bf16.msra.mxu1 %v3360_v25  ;;  %v3446_v24 = vld [vmem:[#allocation2 + $0x44c] ss:$16 sps:$4 sm:$0xff]   ;;  %v3441_v25 = vld [vmem:[#allocation2 + $0x440] ss:$16 sps:$4 sm:$0xff]  }
  0x65   :  { %1317 = vmatprep.subr.bf16.mxu0 %v3365_v26  ;;  %1489 = vmatprep.subr.bf16.mxu1 %v3368_v27  ;;  %v3444_v26 = vld [vmem:[#allocation2 + $0x448] ss:$16 sps:$4 sm:$0xff]   ;;  %v3449_v27 = vld [vmem:[#allocation2 + $0x464] ss:$16 sps:$4 sm:$0xff]  }
  0x68   :  { %1318 = vmatpush1.bf16.msra.mxu0 %v3363_v28  ;;  %1490 = vmatpush1.bf16.msra.mxu1 %v3366_v29  ;;  %v3452_v28 = vld [vmem:[#allocation2 + $0x46c] ss:$16 sps:$4 sm:$0xff]   ;;  %v3447_v29 = vld [vmem:[#allocation2 + $0x460] ss:$16 sps:$4 sm:$0xff]  }
  0x69   :  { %1319 = vmatprep.subr.bf16.mxu0 %v3371_v30  ;;  %1491 = vmatprep.subr.bf16.mxu1 %v3374_v31  ;;  %v3450_v30 = vld [vmem:[#allocation2 + $0x468] ss:$16 sps:$4 sm:$0xff]   ;;  %v3455_v31 = vld [vmem:[#allocation2 + $0x484] ss:$16 sps:$4 sm:$0xff]  }
  0x6c   :  { %1320 = vmatpush1.bf16.msra.mxu0 %v3369_v34  ;;  %1492 = vmatpush1.bf16.msra.mxu1 %v3372_v35  ;;  %v3456_v34 = vld [vmem:[#allocation2 + $0x488] ss:$16 sps:$4 sm:$0xff]   ;;  %v3461_v35 = vld [vmem:[#allocation2 + $0x4a4] ss:$16 sps:$4 sm:$0xff]  }
  0x6d   :  { %1321 = vmatprep.subr.bf16.mxu0 %v3377_v37  ;;  %1493 = vmatprep.subr.bf16.mxu1 %v3380_v38  ;;  %v3459_v37 = vld [vmem:[#allocation2 + $0x4a0] ss:$16 sps:$4 sm:$0xff]   ;;  %v3462_v38 = vld [vmem:[#allocation2 + $0x4a8] ss:$16 sps:$4 sm:$0xff]  }
  0x70   :  { %1322 = vmatpush1.bf16.msra.mxu0 %v3375_v39  ;;  %1494 = vmatpush1.bf16.msra.mxu1 %v3378_v40  ;;  %v3467_v39 = vld [vmem:[#allocation2 + $0x4c4] ss:$16 sps:$4 sm:$0xff]   ;;  %v3470_v40 = vld [vmem:[#allocation2 + $0x4cc] ss:$16 sps:$4 sm:$0xff]  }
  0x71   :  { %1323 = vmatprep.subr.bf16.mxu0 %v3383_v41  ;;  %1495 = vmatprep.subr.bf16.mxu1 %v3386_v42  ;;  %v3465_v41 = vld [vmem:[#allocation2 + $0x4c0] ss:$16 sps:$4 sm:$0xff]   ;;  %v3468_v42 = vld [vmem:[#allocation2 + $0x4c8] ss:$16 sps:$4 sm:$0xff]  }
  0x74   :  { %1324 = vmatpush1.bf16.msra.mxu0 %v3381_v43  ;;  %1496 = vmatpush1.bf16.msra.mxu1 %v3384_v44  ;;  %v3473_v43 = vld [vmem:[#allocation2 + $0x4e4] ss:$16 sps:$4 sm:$0xff]   ;;  %v3476_v44 = vld [vmem:[#allocation2 + $0x4ec] ss:$16 sps:$4 sm:$0xff]  }
  0x75   :  { %1325 = vmatprep.subr.bf16.mxu0 %v3389_v45  ;;  %1497 = vmatprep.subr.bf16.mxu1 %v3392_v46  ;;  %v3471_v45 = vld [vmem:[#allocation2 + $0x4e0] ss:$16 sps:$4 sm:$0xff]   ;;  %v3474_v46 = vld [vmem:[#allocation2 + $0x4e8] ss:$16 sps:$4 sm:$0xff]  }
  0x78   :  { %1326 = vmatpush1.bf16.msra.mxu0 %v3387_v47  ;;  %1498 = vmatpush1.bf16.msra.mxu1 %v3390_v48  ;;  %v3479_v47 = vld [vmem:[#allocation2 + $0x504] ss:$16 sps:$4 sm:$0xff]   ;;  %v3482_v48 = vld [vmem:[#allocation2 + $0x50c] ss:$16 sps:$4 sm:$0xff]  }
  0x79   :  { %1327 = vmatprep.subr.bf16.mxu0 %v3395_v49  ;;  %1499 = vmatprep.subr.bf16.mxu1 %v3398_v50  ;;  %v3477_v49 = vld [vmem:[#allocation2 + $0x500] ss:$16 sps:$4 sm:$0xff]   ;;  %v3480_v50 = vld [vmem:[#allocation2 + $0x508] ss:$16 sps:$4 sm:$0xff]  }
  0x7c   :  { %1328 = vmatpush1.bf16.msra.mxu0 %v3393_v51  ;;  %1500 = vmatpush1.bf16.msra.mxu1 %v3396_v52  ;;  %v3485_v51 = vld [vmem:[#allocation2 + $0x524] ss:$16 sps:$4 sm:$0xff]   ;;  %v3488_v52 = vld [vmem:[#allocation2 + $0x52c] ss:$16 sps:$4 sm:$0xff]  }
  0x7d   :  { %1329 = vmatprep.subr.bf16.mxu0 %v3401_v53  ;;  %1501 = vmatprep.subr.bf16.mxu1 %v3404_v54  ;;  %v3483_v53 = vld [vmem:[#allocation2 + $0x520] ss:$16 sps:$4 sm:$0xff]   ;;  %v3486_v54 = vld [vmem:[#allocation2 + $0x528] ss:$16 sps:$4 sm:$0xff]  }
  0x80   :  { %1330 = vmatpush1.bf16.msra.mxu0 %v3399_v55  ;;  %1502 = vmatpush1.bf16.msra.mxu1 %v3402_v56  ;;  %v3491_v55 = vld [vmem:[#allocation2 + $0x544] ss:$16 sps:$4 sm:$0xff]   ;;  %v3494_v56 = vld [vmem:[#allocation2 + $0x54c] ss:$16 sps:$4 sm:$0xff]  }
  0x81   :  { %1331 = vmatprep.subr.bf16.mxu0 %v3407_v57  ;;  %1503 = vmatprep.subr.bf16.mxu1 %v3410_v58  ;;  %v3489_v57 = vld [vmem:[#allocation2 + $0x540] ss:$16 sps:$4 sm:$0xff]   ;;  %v3492_v58 = vld [vmem:[#allocation2 + $0x548] ss:$16 sps:$4 sm:$0xff]  }
  0x84   :  { %1332 = vmatpush1.bf16.msra.mxu0 %v3405_v59  ;;  %1504 = vmatpush1.bf16.msra.mxu1 %v3408_v60  ;;  %v3497_v59 = vld [vmem:[#allocation2 + $0x564] ss:$16 sps:$4 sm:$0xff]   ;;  %v3500_v60 = vld [vmem:[#allocation2 + $0x56c] ss:$16 sps:$4 sm:$0xff]  }
  0x85   :  { %1333 = vmatprep.subr.bf16.mxu0 %v3413_v61  ;;  %1505 = vmatprep.subr.bf16.mxu1 %v3416_v62  ;;  %v3495_v61 = vld [vmem:[#allocation2 + $0x560] ss:$16 sps:$4 sm:$0xff]   ;;  %v3498_v62 = vld [vmem:[#allocation2 + $0x568] ss:$16 sps:$4 sm:$0xff]  }
  0x88   :  { %1334 = vmatpush1.bf16.msra.mxu0 %v3411_v63  ;;  %1506 = vmatpush1.bf16.msra.mxu1 %v3414_v0  ;;  %v3503_v63 = vld [vmem:[#allocation2 + $0x584] ss:$16 sps:$4 sm:$0xff]   ;;  %v3506_v0 = vld [vmem:[#allocation2 + $0x58c] ss:$16 sps:$4 sm:$0xff]  }
  0x89   :  { %1335 = vmatprep.subr.bf16.mxu0 %v3419_v1  ;;  %1507 = vmatprep.subr.bf16.mxu1 %v3422_v2  ;;  %v3501_v1 = vld [vmem:[#allocation2 + $0x580] ss:$16 sps:$4 sm:$0xff]   ;;  %v3504_v2 = vld [vmem:[#allocation2 + $0x588] ss:$16 sps:$4 sm:$0xff]  }
  0x8c   :  { %1336 = vmatpush1.bf16.msra.mxu0 %v3417_v3  ;;  %1508 = vmatpush1.bf16.msra.mxu1 %v3420_v4  ;;  %v3509_v3 = vld [vmem:[#allocation2 + $0x5a4] ss:$16 sps:$4 sm:$0xff]   ;;  %v3512_v4 = vld [vmem:[#allocation2 + $0x5ac] ss:$16 sps:$4 sm:$0xff]  }
  0x8d   :  { %1337 = vmatprep.subr.bf16.mxu0 %v3425_v5  ;;  %1509 = vmatprep.subr.bf16.mxu1 %v3428_v6  ;;  %v3507_v5 = vld [vmem:[#allocation2 + $0x5a0] ss:$16 sps:$4 sm:$0xff]   ;;  %v3510_v6 = vld [vmem:[#allocation2 + $0x5a8] ss:$16 sps:$4 sm:$0xff]  }
  0x90   :  { %1338 = vmatpush1.bf16.msra.mxu0 %v3423_v7  ;;  %1510 = vmatpush1.bf16.msra.mxu1 %v3426_v8  ;;  %v3515_v7 = vld [vmem:[#allocation2 + $0x5c4] ss:$16 sps:$4 sm:$0xff]   ;;  %v3518_v8 = vld [vmem:[#allocation2 + $0x5cc] ss:$16 sps:$4 sm:$0xff]  }
  0x91   :  { %1350 = vmatprep.subr.bf16.mxu0 %v3431_v9  ;;  %1522 = vmatprep.subr.bf16.mxu1 %v3434_v12  ;;  %v3513_v9 = vld [vmem:[#allocation2 + $0x5c0] ss:$16 sps:$4 sm:$0xff]   ;;  %v3524_v12 = vld [vmem:[#allocation2 + $0x5ec] ss:$16 sps:$4 sm:$0xff]  }
  0x93   :  { %1340 = vmatmul.mubr.bf16.vlgmr.msra.gmra.mrb[0].mxu0 %v57_v15  ;;  %1512 = vmatmul.mubr.bf16.vlgmr.msra.gmra.mrb[0].mxu1 %v57_v15  ;;  %v45_v15 = vld [vmem:[%s4246_s0 + $0x20] sm:$0xff] }
  0x94   :  { %1351 = vmatpush1.bf16.msra.mxu0 %v3429_v13  ;;  %1523 = vmatpush1.bf16.msra.mxu1 %v3432_v14  ;;  %v3519_v13 = vld [vmem:[#allocation2 + $0x5e0] ss:$16 sps:$4 sm:$0xff]   ;;  %v3522_v14 = vld [vmem:[#allocation2 + $0x5e8] ss:$16 sps:$4 sm:$0xff]  }
  0x95   :  { %1352 = vmatprep.subr.bf16.mxu0 %v3437_v16  ;;  %1524 = vmatprep.subr.bf16.mxu1 %v3440_v17  ;;  %v52_v16 = vld [vmem:[%s4246_s0 + $0x58] sm:$0xff]  ;;  %v3527_v17 = vld [vmem:[#allocation2 + $0x604] ss:$16 sps:$4 sm:$0xff]  }
  0x96   :  { %1382 = vmatprep.mubr.bf16.mxu0 %v60_v23  ;;  %1554 = vmatprep.mubr.bf16.mxu1 %v60_v23  ;;  %v59_v21 = vpack.c.bf16 %v52_v16, %v45_v15  ;;  %v3558_v23 = vld [vmem:[%s4249_s3 + $0xc8] ss:$12 sps:$4 sm:$0xff]   ;;  %v258_v16 = vld [vmem:[%s4248_s2] sm:$0xf] }
  0x98   :  { %1353 = vmatpush1.bf16.msra.mxu0 %v3435_v19  ;;  %1525 = vmatpush1.bf16.msra.mxu1 %v3438_v20  ;;  %v3525_v19 = vld [vmem:[#allocation2 + $0x600] ss:$16 sps:$4 sm:$0xff]   ;;  %v3528_v20 = vld [vmem:[#allocation2 + $0x608] ss:$16 sps:$4 sm:$0xff]  }
  0x99   :  { %1354 = vmatprep.subr.bf16.mxu0 %v3443_v22  ;;  %1526 = vmatprep.subr.bf16.mxu1 %v3446_v24  ;;  %v3533_v22 = vld [vmem:[%s4249_s3 + $0x4] ss:$12 sps:$4 sm:$0xff]   ;;  %v3746_v24 = vmov 0  }
  0x9c   :  { %1355 = vmatpush1.bf16.msra.mxu0 %v3441_v25  ;;  %1527 = vmatpush1.bf16.msra.mxu1 %v3444_v26  ;;  %v47_v25 = vld [vmem:[%s4246_s0 + $0x30] sm:$0xff]  ;;  %v54_v26 = vld [vmem:[%s4246_s0 + $0x68] sm:$0xff] }
  0x9d   :  { %1356 = vmatprep.subr.bf16.mxu0 %v3449_v27  ;;  %1528 = vmatprep.subr.bf16.mxu1 %v3452_v28  ;;  %v3531_v27 = vld [vmem:[%s4249_s3] ss:$12 sps:$4 sm:$0xff]   ;;  %v61_v28 = vpack.c.bf16 %v54_v26, %v47_v25 }
  0xa0   :  { %1357 = vmatpush1.bf16.msra.mxu0 %v3447_v29  ;;  %1529 = vmatpush1.bf16.msra.mxu1 %v3450_v30  ;;  %v3559_v29 = vld [vmem:[%s4249_s3 + $0x8] ss:$12 sps:$4 sm:$0xff]  }
  0xa1   :  { %1358 = vmatprep.subr.bf16.mxu0 %v3455_v31  ;;  %1530 = vmatprep.subr.bf16.mxu1 %v3458_v32  ;;  %v3536_v30 = vld [vmem:[%s4249_s3 + $0x1c] ss:$12 sps:$4 sm:$0xff]   ;;  %v3563_v31 = vld [vmem:[%s4249_s3 + $0xe0] ss:$12 sps:$4 sm:$0xff]   ;;  %v3534_v32 = vld [vmem:[%s4249_s3 + $0x18] ss:$12 sps:$4 sm:$0xff]  }
  0xa4   :  { %1359 = vmatpush1.bf16.msra.mxu0 %v3453_v33  ;;  %1531 = vmatpush1.bf16.msra.mxu1 %v3456_v34  ;;  %v3564_v33 = vld [vmem:[%s4249_s3 + $0x20] ss:$12 sps:$4 sm:$0xff]  }
  0xa5   :  { %1360 = vmatprep.subr.bf16.mxu0 %v3461_v35  ;;  %1532 = vmatprep.subr.bf16.mxu1 %v3464_v36  ;;  %v3539_v34 = vld [vmem:[%s4249_s3 + $0x34] ss:$12 sps:$4 sm:$0xff]   ;;  %v3568_v35 = vld [vmem:[%s4249_s3 + $0xf8] ss:$12 sps:$4 sm:$0xff]   ;;  %v3537_v36 = vld [vmem:[%s4249_s3 + $0x30] ss:$12 sps:$4 sm:$0xff]  }
  0xa8   :  { %1361 = vmatpush1.bf16.msra.mxu0 %v3459_v37  ;;  %1533 = vmatpush1.bf16.msra.mxu1 %v3462_v38  ;;  %v3569_v37 = vld [vmem:[%s4249_s3 + $0x38] ss:$12 sps:$4 sm:$0xff]  }
  0xa9   :  { %1362 = vmatprep.subr.bf16.mxu0 %v3467_v39  ;;  %1534 = vmatprep.subr.bf16.mxu1 %v3470_v40  ;;  %v3542_v38 = vld [vmem:[%s4249_s3 + $0x4c] ss:$12 sps:$4 sm:$0xff]   ;;  %v3573_v39 = vld [vmem:[%s4249_s3 + $0x110] ss:$12 sps:$4 sm:$0xff]   ;;  %v3540_v40 = vld [vmem:[%s4249_s3 + $0x48] ss:$12 sps:$4 sm:$0xff]  }
  0xac   :  { %1363 = vmatpush1.bf16.msra.mxu0 %v3465_v41  ;;  %1535 = vmatpush1.bf16.msra.mxu1 %v3468_v42  ;;  %v3545_v41 = vld [vmem:[%s4249_s3 + $0x64] ss:$12 sps:$4 sm:$0xff]   ;;  %v3543_v42 = vld [vmem:[%s4249_s3 + $0x60] ss:$12 sps:$4 sm:$0xff]  }
  0xad   :  { %1364 = vmatprep.subr.bf16.mxu0 %v3473_v43  ;;  %1536 = vmatprep.subr.bf16.mxu1 %v3476_v44  ;;  %v3548_v43 = vld [vmem:[%s4249_s3 + $0x7c] ss:$12 sps:$4 sm:$0xff]   ;;  %v3546_v44 = vld [vmem:[%s4249_s3 + $0x78] ss:$12 sps:$4 sm:$0xff]  }
  0xb0   :  { %1365 = vmatpush1.bf16.msra.mxu0 %v3471_v45  ;;  %1537 = vmatpush1.bf16.msra.mxu1 %v3474_v46  ;;  %v3551_v45 = vld [vmem:[%s4249_s3 + $0x94] ss:$12 sps:$4 sm:$0xff]   ;;  %v3549_v46 = vld [vmem:[%s4249_s3 + $0x90] ss:$12 sps:$4 sm:$0xff]  }
  0xb1   :  { %1366 = vmatprep.subr.bf16.mxu0 %v3479_v47  ;;  %1538 = vmatprep.subr.bf16.mxu1 %v3482_v48  ;;  %v3554_v47 = vld [vmem:[%s4249_s3 + $0xac] ss:$12 sps:$4 sm:$0xff]   ;;  %v3552_v48 = vld [vmem:[%s4249_s3 + $0xa8] ss:$12 sps:$4 sm:$0xff]  }
  0xb4   :  { %1367 = vmatpush1.bf16.msra.mxu0 %v3477_v49  ;;  %1539 = vmatpush1.bf16.msra.mxu1 %v3480_v50  ;;  %v3557_v49 = vld [vmem:[%s4249_s3 + $0xc4] ss:$12 sps:$4 sm:$0xff]   ;;  %v3555_v50 = vld [vmem:[%s4249_s3 + $0xc0] ss:$12 sps:$4 sm:$0xff]  }
  0xb5   :  { %1368 = vmatprep.subr.bf16.mxu0 %v3485_v51  ;;  %1540 = vmatprep.subr.bf16.mxu1 %v3488_v52  ;;  %v3562_v51 = vld [vmem:[%s4249_s3 + $0xdc] ss:$12 sps:$4 sm:$0xff]   ;;  %v3560_v52 = vld [vmem:[%s4249_s3 + $0xd8] ss:$12 sps:$4 sm:$0xff]  }
  0xb8   :  { %1369 = vmatpush1.bf16.msra.mxu0 %v3483_v53  ;;  %1541 = vmatpush1.bf16.msra.mxu1 %v3486_v54  ;;  %v3567_v53 = vld [vmem:[%s4249_s3 + $0xf4] ss:$12 sps:$4 sm:$0xff]   ;;  %v3565_v54 = vld [vmem:[%s4249_s3 + $0xf0] ss:$12 sps:$4 sm:$0xff]  }
  0xb9   :  { %1370 = vmatprep.subr.bf16.mxu0 %v3491_v55  ;;  %1542 = vmatprep.subr.bf16.mxu1 %v3494_v56  ;;  %v3572_v55 = vld [vmem:[%s4249_s3 + $0x10c] ss:$12 sps:$4 sm:$0xff]   ;;  %v3570_v56 = vld [vmem:[%s4249_s3 + $0x108] ss:$12 sps:$4 sm:$0xff]  }
  0xbc   :  { %1371 = vmatpush1.bf16.msra.mxu0 %v3489_v57  ;;  %1543 = vmatpush1.bf16.msra.mxu1 %v3492_v58  ;;  %v3574_v57 = vld [vmem:[%s4249_s3 + $0x50] ss:$12 sps:$4 sm:$0xff]  }
  0xbd   :  { %1372 = vmatprep.subr.bf16.mxu0 %v3497_v59  ;;  %1544 = vmatprep.subr.bf16.mxu1 %v3500_v60  ;;  %v3577_v58 = vld [vmem:[%s4249_s3 + $0x124] ss:$12 sps:$4 sm:$0xff]   ;;  %v3578_v59 = vld [vmem:[%s4249_s3 + $0x128] ss:$12 sps:$4 sm:$0xff]   ;;  %v3575_v60 = vld [vmem:[%s4249_s3 + $0x120] ss:$12 sps:$4 sm:$0xff]  }
  0xc0   :  { %1373 = vmatpush1.bf16.msra.mxu0 %v3495_v61  ;;  %1545 = vmatpush1.bf16.msra.mxu1 %v3498_v62  ;;  %v3579_v61 = vld [vmem:[%s4249_s3 + $0x68] ss:$12 sps:$4 sm:$0xff]  }
  0xc1   :  { %1374 = vmatprep.subr.bf16.mxu0 %v3503_v63  ;;  %1546 = vmatprep.subr.bf16.mxu1 %v3506_v0  ;;  %v3582_v62 = vld [vmem:[%s4249_s3 + $0x13c] ss:$12 sps:$4 sm:$0xff]   ;;  %v3583_v63 = vld [vmem:[%s4249_s3 + $0x140] ss:$12 sps:$4 sm:$0xff]   ;;  %v3580_v0 = vld [vmem:[%s4249_s3 + $0x138] ss:$12 sps:$4 sm:$0xff]  }
  0xc4   :  { %1375 = vmatpush1.bf16.msra.mxu0 %v3501_v1  ;;  %1547 = vmatpush1.bf16.msra.mxu1 %v3504_v2  ;;  %v3584_v1 = vld [vmem:[%s4249_s3 + $0x80] ss:$12 sps:$4 sm:$0xff]  }
  0xc5   :  { %1376 = vmatprep.subr.bf16.mxu0 %v3509_v3  ;;  %1548 = vmatprep.subr.bf16.mxu1 %v3512_v4  ;;  %v3587_v2 = vld [vmem:[%s4249_s3 + $0x154] ss:$12 sps:$4 sm:$0xff]   ;;  %v3588_v3 = vld [vmem:[%s4249_s3 + $0x158] ss:$12 sps:$4 sm:$0xff]   ;;  %v3585_v4 = vld [vmem:[%s4249_s3 + $0x150] ss:$12 sps:$4 sm:$0xff]  }
  0xc8   :  { %1377 = vmatpush1.bf16.msra.mxu0 %v3507_v5  ;;  %1549 = vmatpush1.bf16.msra.mxu1 %v3510_v6  ;;  %v3589_v5 = vld [vmem:[%s4249_s3 + $0x98] ss:$12 sps:$4 sm:$0xff]  }
  0xc9   :  { %1378 = vmatprep.subr.bf16.mxu0 %v3515_v7  ;;  %1550 = vmatprep.subr.bf16.mxu1 %v3518_v8  ;;  %v3592_v6 = vld [vmem:[%s4249_s3 + $0x16c] ss:$12 sps:$4 sm:$0xff]   ;;  %v3593_v7 = vld [vmem:[%s4249_s3 + $0x170] ss:$12 sps:$4 sm:$0xff]   ;;  %v3590_v8 = vld [vmem:[%s4249_s3 + $0x168] ss:$12 sps:$4 sm:$0xff]  }
  0xcc   :  { %1379 = vmatpush1.bf16.msra.mxu0 %v3513_v9  ;;  %1551 = vmatpush1.bf16.msra.mxu1 %v3516_v10  ;;  %v3594_v9 = vld [vmem:[%s4249_s3 + $0xb0] ss:$12 sps:$4 sm:$0xff]  }
  0xcd   :  { %1380 = vmatprep.subr.bf16.mxu0 %v3521_v11  ;;  %1552 = vmatprep.subr.bf16.mxu1 %v3524_v12  ;;  %v3597_v10 = vld [vmem:[%s4249_s3 + $0x184] ss:$12 sps:$4 sm:$0xff]   ;;  %v3598_v11 = vld [vmem:[%s4249_s3 + $0x248] ss:$12 sps:$4 sm:$0xff]   ;;  %v260_v12 = vlaneseq }
  0xd0   :  { %1381 = vmatpush1.bf16.msra.mxu0 %v3519_v13  ;;  %1553 = vmatpush1.bf16.msra.mxu1 %v3522_v14  ;;  %v3993_v13 = vshrl.u32 %v260_v12, 7  ;;  %v3629_v12 = vld [vmem:[%s4249_s3 + $0x218] ss:$12 sps:$4 sm:$0xff]  }
  0xd1   :  { %1393 = vmatprep.subr.bf16.mxu0 %v3527_v17  ;;  %1565 = vmatprep.subr.bf16.mxu1 %v3530_v18 }
  0xd2   :  { %v262_v14 = vsub.s32 0, %v3993_v13  ;;  %v270_v15 = vsub.s32 2, %v3993_v13  ;;  %v266_v17 = vsub.s32 1, %v3993_v13  ;;  %v274_v18 = vsub.s32 3, %v3993_v13  ;;  %v3675_v13 = vld [vmem:[%s4251_s5 + $0x80] sm:$0xff]  }
  0xd3   :  { %1383 = vmatmul.mubr.bf16.vlgmr.msra.gmra.mrb[0].mxu0 %v59_v21  ;;  %1555 = vmatmul.mubr.bf16.vlgmr.msra.gmra.mrb[0].mxu1 %v59_v21 }
  0xd4   :  { %1394 = vmatpush1.bf16.msra.mxu0 %v3525_v19  ;;  %1566 = vmatpush1.bf16.msra.mxu1 %v3528_v20  ;;  %v263_v19 = vrot.slane %v258_v16, %v262_v14  ;;  %v271_v20 = vrot.slane %v258_v16, %v270_v15  ;;  %v267_v21 = vrot.slane %v258_v16, %v266_v17 }
  0xd5   :  { %1425 = vmatprep.mubr.bf16.mxu0 %v3746_v24  ;;  %1597 = vmatprep.mubr.bf16.mxu1 %v3746_v24 }
  0xd6   :  { %2277 = vmatprep.subr.bf16.mxu0 %v3533_v22  ;;  %3096 = vmatprep.subr.bf16.mxu1 %v3558_v23  ;;  %v275_v22 = vrot.slane %v258_v16, %v274_v18  ;;  %v3632_v16 = vld [vmem:[%s4249_s3 + $0x22c] ss:$12 sps:$4 sm:$0xff]   ;;  %v3633_v18 = vld [vmem:[%s4249_s3 + $0x2f0] ss:$12 sps:$4 sm:$0xff]  }
  0xdf   :  { %2964 = vmatmul.mubr.msk.bf16.vlgmr.msra.gmra.mrb[0].mxu0 %vm1260_vm0, %v61_v28  ;;  %2965 = vmatmul.mubr.msk.bf16.vlgmr.msra.gmra.mrb[0].mxu1 %vm1260_vm0, %v61_v28 }
  0xe0   :  { %2278 = vmatpush1.bf16.msra.mxu0 %v3531_v27  ;;  %3097 = vmatpush3.bf16.msra.mxu1 %v3559_v29 }
  0xe1   :  { %2279 = vmatprep.subr.bf16.mxu0 %v3536_v30  ;;  %3098 = vmatprep.subr.bf16.mxu1 %v3563_v31 }
  0xe4   :  { %2280 = vmatpush1.bf16.msra.mxu0 %v3534_v32  ;;  %3099 = vmatpush3.bf16.msra.mxu1 %v3564_v33 }
  0xe5   :  { %2281 = vmatprep.subr.bf16.mxu0 %v3539_v34  ;;  %3100 = vmatprep.subr.bf16.mxu1 %v3568_v35 }
  0xe8   :  { %2282 = vmatpush1.bf16.msra.mxu0 %v3537_v36  ;;  %3101 = vmatpush3.bf16.msra.mxu1 %v3569_v37 }
  0xe9   :  { %2283 = vmatprep.subr.bf16.mxu0 %v3542_v38  ;;  %3102 = vmatprep.subr.bf16.mxu1 %v3573_v39 }
  0xec   :  { %2284 = vmatpush1.bf16.msra.mxu0 %v3540_v40  ;;  %3103 = vmatpush3.bf16.msra.mxu1 %v3574_v57  ;;  %v3607_v57 = vld [vmem:[%s4249_s3 + $0x1b4] ss:$12 sps:$4 sm:$0xff]  }
  0xed   :  { %2285 = vmatprep.subr.bf16.mxu0 %v3545_v41  ;;  %3104 = vmatprep.subr.bf16.mxu1 %v3578_v59  ;;  %v3605_v59 = vld [vmem:[%s4249_s3 + $0x1b0] ss:$12 sps:$4 sm:$0xff]  }
  0xf0   :  { %2286 = vmatpush1.bf16.msra.mxu0 %v3543_v42  ;;  %3105 = vmatpush3.bf16.msra.mxu1 %v3579_v61  ;;  %v3612_v61 = vld [vmem:[%s4249_s3 + $0x1cc] ss:$12 sps:$4 sm:$0xff]  }
  0xf1   :  { %2287 = vmatprep.subr.bf16.mxu0 %v3548_v43  ;;  %3106 = vmatprep.subr.bf16.mxu1 %v3583_v63  ;;  %v3610_v63 = vld [vmem:[%s4249_s3 + $0x1c8] ss:$12 sps:$4 sm:$0xff]  }
  0xf4   :  { %2288 = vmatpush1.bf16.msra.mxu0 %v3546_v44  ;;  %3107 = vmatpush3.bf16.msra.mxu1 %v3584_v1  ;;  %v3617_v1 = vld [vmem:[%s4249_s3 + $0x1e4] ss:$12 sps:$4 sm:$0xff]  }
  0xf5   :  { %2289 = vmatprep.subr.bf16.mxu0 %v3551_v45  ;;  %3108 = vmatprep.subr.bf16.mxu1 %v3588_v3  ;;  %v3615_v3 = vld [vmem:[%s4249_s3 + $0x1e0] ss:$12 sps:$4 sm:$0xff]  }
  0xf8   :  { %2290 = vmatpush1.bf16.msra.mxu0 %v3549_v46  ;;  %3109 = vmatpush3.bf16.msra.mxu1 %v3589_v5  ;;  %v3622_v5 = vld [vmem:[%s4249_s3 + $0x1fc] ss:$12 sps:$4 sm:$0xff]  }
  0xf9   :  { %2291 = vmatprep.subr.bf16.mxu0 %v3554_v47  ;;  %3110 = vmatprep.subr.bf16.mxu1 %v3593_v7  ;;  %v3620_v7 = vld [vmem:[%s4249_s3 + $0x1f8] ss:$12 sps:$4 sm:$0xff]  }
  0xfc   :  { %2292 = vmatpush1.bf16.msra.mxu0 %v3552_v48  ;;  %3111 = vmatpush3.bf16.msra.mxu1 %v3594_v9  ;;  %v3627_v9 = vld [vmem:[%s4249_s3 + $0x214] ss:$12 sps:$4 sm:$0xff]  }
  0xfd   :  { %2293 = vmatprep.subr.bf16.mxu0 %v3557_v49  ;;  %3118 = vmatprep.subr.bf16.mxu1 %v3598_v11  ;;  %v3625_v11 = vld [vmem:[%s4249_s3 + $0x210] ss:$12 sps:$4 sm:$0xff]  }
 0x100   :  { %2294 = vmatpush1.bf16.msra.mxu0 %v3555_v50  ;;  %v3595_v50 = vld [vmem:[%s4249_s3 + $0x180] ss:$12 sps:$4 sm:$0xff]  }
 0x101   :  { %2295 = vmatprep.subr.bf16.mxu0 %v3562_v51  ;;  %v3599_v51 = vld [vmem:[%s4249_s3 + $0x188] ss:$12 sps:$4 sm:$0xff]  }
 0x104   :  { %2296 = vmatpush1.bf16.msra.mxu0 %v3560_v52 }
 0x105   :  { %2297 = vmatprep.subr.bf16.mxu0 %v3567_v53  ;;  %v3602_v53 = vld [vmem:[%s4249_s3 + $0x19c] ss:$12 sps:$4 sm:$0xff]  }
 0x108   :  { %2298 = vmatpush1.bf16.msra.mxu0 %v3565_v54  ;;  %v3603_v54 = vld [vmem:[%s4249_s3 + $0x260] ss:$12 sps:$4 sm:$0xff]  }
 0x109   :  { %2299 = vmatprep.subr.bf16.mxu0 %v3572_v55  ;;  %v3600_v55 = vld [vmem:[%s4249_s3 + $0x198] ss:$12 sps:$4 sm:$0xff]  }
 0x10c   :  { %2300 = vmatpush1.bf16.msra.mxu0 %v3570_v56  ;;  %v3604_v56 = vld [vmem:[%s4249_s3 + $0x1a0] ss:$12 sps:$4 sm:$0xff]  }
 0x10d   :  { %2301 = vmatprep.subr.bf16.mxu0 %v3577_v58  ;;  %v3608_v58 = vld [vmem:[%s4249_s3 + $0x278] ss:$12 sps:$4 sm:$0xff]  }
 0x110   :  { %2302 = vmatpush1.bf16.msra.mxu0 %v3575_v60  ;;  %v3609_v60 = vld [vmem:[%s4249_s3 + $0x1b8] ss:$12 sps:$4 sm:$0xff]  }
 0x111   :  { %2303 = vmatprep.subr.bf16.mxu0 %v3582_v62  ;;  %v3613_v62 = vld [vmem:[%s4249_s3 + $0x290] ss:$12 sps:$4 sm:$0xff]  }
 0x114   :  { %2304 = vmatpush1.bf16.msra.mxu0 %v3580_v0  ;;  %v3614_v0 = vld [vmem:[%s4249_s3 + $0x1d0] ss:$12 sps:$4 sm:$0xff]  }
 0x115   :  { %2305 = vmatprep.subr.bf16.mxu0 %v3587_v2  ;;  %v3618_v2 = vld [vmem:[%s4249_s3 + $0x2a8] ss:$12 sps:$4 sm:$0xff]  }
 0x118   :  { %2306 = vmatpush1.bf16.msra.mxu0 %v3585_v4  ;;  %v3619_v4 = vld [vmem:[%s4249_s3 + $0x1e8] ss:$12 sps:$4 sm:$0xff]  }
 0x119   :  { %2307 = vmatprep.subr.bf16.mxu0 %v3592_v6  ;;  %v3623_v6 = vld [vmem:[%s4249_s3 + $0x2c0] ss:$12 sps:$4 sm:$0xff]  }
 0x11c   :  { %2308 = vmatpush1.bf16.msra.mxu0 %v3590_v8  ;;  %v3624_v8 = vld [vmem:[%s4249_s3 + $0x200] ss:$12 sps:$4 sm:$0xff]  }
 0x11d   :  { %2320 = vmatprep.subr.bf16.mxu0 %v3597_v10  ;;  %v3628_v10 = vld [vmem:[%s4249_s3 + $0x2d8] ss:$12 sps:$4 sm:$0xff]  }
 0x1b2   :  { %v1427_v23 = vpop.f32.mrb[0].mxu0  ;;  %v1599_v24 = vpop.f32.mrb[0].mxu1 }
 0x1b3   :  { %v3191_v25 = vadd.f32 %v1427_v23, %v263_v19  ;;  %v3195_v26 = vadd.f32 %v1599_v24, %v271_v20  ;;  %v1429_v27 = vpop.f32.mrb[1].mxu0  ;;  %v1601_v28 = vpop.f32.mrb[1].mxu1  ;;  %v3640_v23 = vld [vmem:[%s4249_s3 + $0x25c] ss:$12 sps:$4 sm:$0xff]   ;;  %v3638_v24 = vld [vmem:[%s4249_s3 + $0x258] ss:$12 sps:$4 sm:$0xff]  }
 0x1b4   :  { %v3192_v29 = vadd.f32 %v1429_v27, %v267_v21  ;;  %v3196_v30 = vadd.f32 %v1601_v28, %v275_v22  ;;  %v1431_v31 = vpop.f32.mrb[2].mxu0  ;;  %v1603_v32 = vpop.f32.mrb[2].mxu1  ;;  %v3646_v27 = vld [vmem:[%s4249_s3 + $0x28c] ss:$12 sps:$4 sm:$0xff]   ;;  %v3644_v28 = vld [vmem:[%s4249_s3 + $0x288] ss:$12 sps:$4 sm:$0xff]  }
 0x1b5   :  { %3683 = vtanh.f32 %v3191_v25  ;;  %v3193_v33 = vadd.f32 %v1431_v31, %v263_v19  ;;  %v1433_v34 = vpop.f32.mrb[3].mxu0  ;;  %v1605_v35 = vpop.f32.mrb[3].mxu1  ;;  %v3197_v36 = vadd.f32 %v1603_v32, %v271_v20  ;;  %v3630_v19 = vld [vmem:[%s4249_s3 + $0x228] ss:$12 sps:$4 sm:$0xff]   ;;  %v3634_v20 = vld [vmem:[%s4249_s3 + $0x230] ss:$12 sps:$4 sm:$0xff]  }
 0x1b6   :  { %3685 = vtanh.f32 %v3195_v26  ;;  %v3194_v37 = vadd.f32 %v1433_v34, %v267_v21  ;;  %v3198_v38 = vadd.f32 %v1605_v35, %v275_v22  ;;  %v3637_v21 = vld [vmem:[%s4249_s3 + $0x244] ss:$12 sps:$4 sm:$0xff]   ;;  %v3635_v22 = vld [vmem:[%s4249_s3 + $0x240] ss:$12 sps:$4 sm:$0xff]   ;;  %v3652_v31 = vld [vmem:[%s4249_s3 + $0x2bc] ss:$12 sps:$4 sm:$0xff]  }
 0x1b7   :  { %3687 = vtanh.f32 %v3192_v29  ;;  %v3643_v25 = vld [vmem:[%s4249_s3 + $0x274] ss:$12 sps:$4 sm:$0xff]   ;;  %v3641_v26 = vld [vmem:[%s4249_s3 + $0x270] ss:$12 sps:$4 sm:$0xff]   ;;  %v3650_v32 = vld [vmem:[%s4249_s3 + $0x2b8] ss:$12 sps:$4 sm:$0xff]  }
 0x1b8   :  { %3689 = vtanh.f32 %v3196_v30  ;;  %v3649_v29 = vld [vmem:[%s4249_s3 + $0x2a4] ss:$12 sps:$4 sm:$0xff]   ;;  %v3647_v30 = vld [vmem:[%s4249_s3 + $0x2a0] ss:$12 sps:$4 sm:$0xff]  }
 0x1b9   :  { %3691 = vtanh.f32 %v3193_v33  ;;  %v3655_v33 = vld [vmem:[%s4249_s3 + $0x2d4] ss:$12 sps:$4 sm:$0xff]   ;;  %v3653_v34 = vld [vmem:[%s4249_s3 + $0x2d0] ss:$12 sps:$4 sm:$0xff]   ;;  %v3658_v35 = vld [vmem:[%s4249_s3 + $0x2ec] ss:$12 sps:$4 sm:$0xff]  }
 0x1ba   :  { %3693 = vtanh.f32 %v3197_v36  ;;  %v3656_v36 = vld [vmem:[%s4249_s3 + $0x2e8] ss:$12 sps:$4 sm:$0xff]  }
 0x1bb   :  { %3695 = vtanh.f32 %v3194_v37  ;;  %v3659_v37 = vld [vmem:[%s4251_s5 + $0x40] sm:$0xff]  }
 0x1bc   :  { %3697 = vtanh.f32 %v3198_v38  ;;  %v3660_v38 = vld [vmem:[%s4251_s5] sm:$0xff]  }
 0x1bf   :  { %v3684_v39 = vpop.eup %3683 }
 0x1c0   :  { %v3686_v40 = vpop.eup %3685 }
 0x1c1   :  { %v3688_v41 = vpop.eup %3687 }
 0x1c2   :  { %v3690_v42 = vpop.eup %3689 }
 0x1c3   :  { %v3692_v43 = vpop.eup %3691 }
 0x1c4   :  { %v3694_v44 = vpop.eup %3693  ;;  %v1616_v45 = vpack.c.bf16 %v3692_v43, %v3684_v39  ;;  %v3661_v39 = vld [vmem:[%s4251_s5 + $0x48] sm:$0xff]   ;;  %v3665_v43 = vld [vmem:[%s4251_s5 + $0x58] sm:$0xff]  }
 0x1c5   :  { %v3696_v46 = vpop.eup %3695  ;;  %v4008_v47 = vpack.c.bf16 %v3694_v44, %v3686_v40  ;;  %v3662_v40 = vld [vmem:[%s4251_s5 + $0x8] sm:$0xff]   ;;  %v3666_v44 = vld [vmem:[%s4251_s5 + $0x18] sm:$0xff]  }
 0x1c6   :  { %v3698_v48 = vpop.eup %3697  ;;  %v1617_v49 = vpack.c.bf16 %v3696_v46, %v3688_v41  ;;  %v3663_v41 = vld [vmem:[%s4251_s5 + $0x50] sm:$0xff]   ;;  %v3668_v46 = vld [vmem:[%s4251_s5 + $0x20] sm:$0xff]  }
 0x1c7   :  { %v1619_v52 = vpack.c.bf16 %v3698_v48, %v3690_v42  ;;  %v3664_v42 = vld [vmem:[%s4251_s5 + $0x10] sm:$0xff]   ;;  %v3670_v48 = vld [vmem:[%s4251_s5 + $0x28] sm:$0xff]  }
 0x1c8   :  { %2309 = vmatprep.mubr.bf16.mxu0 %v1617_v49  ;;  %2395 = vmatprep.mubr.bf16.mxu1 %v1617_v49  ;;  %v3671_v49 = vld [vmem:[%s4251_s5 + $0x70] sm:$0xff]  }
 0x1c9   :  { %2310 = vmatmul.mubr.bf16.vlgmr.msra.gmra.mrb[4].mxu0 %v1616_v45  ;;  %2396 = vmatmul.mubr.bf16.vlgmr.msra.gmra.mrb[4].mxu1 %v1616_v45  ;;  %v3667_v45 = vld [vmem:[%s4251_s5 + $0x60] sm:$0xff]  }
 0x1ca   :  { %2321 = vmatpush1.bf16.msra.mxu0 %v3595_v50  ;;  %3119 = vmatpush3.bf16.msra.mxu1 %v3599_v51  ;;  %v3672_v50 = vld [vmem:[%s4251_s5 + $0x30] sm:$0xff]   ;;  %v3673_v51 = vld [vmem:[%s4251_s5 + $0x78] sm:$0xff]  }
 0x1cb   :  { %2352 = vmatprep.mubr.bf16.mxu0 %v1619_v52  ;;  %2436 = vmatprep.mubr.bf16.mxu1 %v1619_v52  ;;  %v3674_v52 = vld [vmem:[%s4251_s5 + $0x38] sm:$0xff]  }
 0x1cc   :  { %2322 = vmatprep.subr.bf16.mxu0 %v3602_v53  ;;  %3120 = vmatprep.subr.bf16.mxu1 %v3603_v54  ;;  %v3747_v53 = vmov 0.0  }
 0x1ce   :  { %2323 = vmatpush1.bf16.msra.mxu0 %v3600_v55  ;;  %3121 = vmatpush3.bf16.msra.mxu1 %v3604_v56 }
 0x1cf   :  { %2324 = vmatprep.subr.bf16.mxu0 %v3607_v57  ;;  %3122 = vmatprep.subr.bf16.mxu1 %v3608_v58 }
 0x1d2   :  { %2325 = vmatpush1.bf16.msra.mxu0 %v3605_v59  ;;  %3123 = vmatpush3.bf16.msra.mxu1 %v3609_v60  ;;  %v1748_v60 = vld [vmem:[%s4250_s4] sm:$0x7] }
 0x1d3   :  { %2326 = vmatprep.subr.bf16.mxu0 %v3612_v61  ;;  %3124 = vmatprep.subr.bf16.mxu1 %v3613_v62  ;;  %v1761_v61 = vrot.slane %v1748_v60, %v270_v15  ;;  %v1757_v15 = vrot.slane %v1748_v60, %v266_v17  ;;  %v3676_v17 = vld [vmem:[%s4251_s5 + $0x88] sm:$0xff]  }
 0x1d6   :  { %2327 = vmatpush1.bf16.msra.mxu0 %v3610_v63  ;;  %3125 = vmatpush3.bf16.msra.mxu1 %v3614_v0 }
 0x1d7   :  { %2328 = vmatprep.subr.bf16.mxu0 %v3617_v1  ;;  %3126 = vmatprep.subr.bf16.mxu1 %v3618_v2 }
 0x1da   :  { %2329 = vmatpush1.bf16.msra.mxu0 %v3615_v3  ;;  %3127 = vmatpush3.bf16.msra.mxu1 %v3619_v4 }
 0x1db   :  { %2330 = vmatprep.subr.bf16.mxu0 %v3622_v5  ;;  %3128 = vmatprep.subr.bf16.mxu1 %v3623_v6 }
 0x1de   :  { %2331 = vmatpush1.bf16.msra.mxu0 %v3620_v7  ;;  %3129 = vmatpush3.bf16.msra.mxu1 %v3624_v8 }
 0x1df   :  { %2332 = vmatprep.subr.bf16.mxu0 %v3627_v9  ;;  %3130 = vmatprep.subr.bf16.mxu1 %v3628_v10 }
 0x1e2   :  { %2333 = vmatpush1.bf16.msra.mxu0 %v3625_v11  ;;  %3131 = vmatpush3.bf16.msra.mxu1 %v3629_v12  ;;  %v1753_v11 = vrot.slane %v1748_v60, %v262_v14 }
 0x1e3   :  { %2334 = vmatprep.subr.bf16.mxu0 %v3632_v16  ;;  %3132 = vmatprep.subr.bf16.mxu1 %v3633_v18 }
 0x1e6   :  { %2335 = vmatpush1.bf16.msra.mxu0 %v3630_v19  ;;  %3133 = vmatpush3.bf16.msra.mxu1 %v3634_v20 }
 0x1e7   :  { %2336 = vmatprep.subr.bf16.mxu0 %v3637_v21  ;;  %3140 = vmatprep.subr.bf16.mxu1 %v3659_v37 }
 0x1e9   :  { %2437 = vmatmul.mubr.bf16.vlgmr.msra.gmra.mrb[8].mxu1 %v4008_v47 }
 0x1ea   :  { %2337 = vmatpush1.bf16.msra.mxu0 %v3635_v22  ;;  %3141 = vmatpush3.bf16.msra.mxu1 %v3660_v38 }
 0x1eb   :  { %2338 = vmatprep.subr.bf16.mxu0 %v3640_v23  ;;  %3142 = vmatprep.subr.bf16.mxu1 %v3661_v39 }
 0x1ee   :  { %2339 = vmatpush1.bf16.msra.mxu0 %v3638_v24  ;;  %3143 = vmatpush3.bf16.msra.mxu1 %v3662_v40 }
 0x1ef   :  { %2340 = vmatprep.subr.bf16.mxu0 %v3643_v25  ;;  %3144 = vmatprep.subr.bf16.mxu1 %v3663_v41  ;;  %v3062_v41 = vld [vmem:[%s4252_s6] ss:$0 sm:$0xff] }
 0x1f2   :  { %2341 = vmatpush1.bf16.msra.mxu0 %v3641_v26  ;;  %3145 = vmatpush3.bf16.msra.mxu1 %v3664_v42 }
 0x1f3   :  { %2342 = vmatprep.subr.bf16.mxu0 %v3646_v27  ;;  %3146 = vmatprep.subr.bf16.mxu1 %v3665_v43 }
 0x1f6   :  { %2343 = vmatpush1.bf16.msra.mxu0 %v3644_v28  ;;  %3147 = vmatpush3.bf16.msra.mxu1 %v3666_v44 }
 0x1f7   :  { %2344 = vmatprep.subr.bf16.mxu0 %v3649_v29  ;;  %3148 = vmatprep.subr.bf16.mxu1 %v3667_v45  ;;  %v3677_v29 = vld [vmem:[%s4251_s5 + $0x90] sm:$0xff]  }
 0x1fa   :  { %2345 = vmatpush1.bf16.msra.mxu0 %v3647_v30  ;;  %3149 = vmatpush3.bf16.msra.mxu1 %v3668_v46  ;;  %v3678_v30 = vld [vmem:[%s4251_s5 + $0x98] sm:$0xff]  }
 0x1fb   :  { %2346 = vmatprep.subr.bf16.mxu0 %v3652_v31  ;;  %v3679_v31 = vld [vmem:[%s4251_s5 + $0xa0] sm:$0xff]  }
 0x1fe   :  { %2347 = vmatpush1.bf16.msra.mxu0 %v3650_v32  ;;  %v3680_v32 = vld [vmem:[%s4251_s5 + $0xa8] sm:$0xff]  }
 0x1ff   :  { %2348 = vmatprep.subr.bf16.mxu0 %v3655_v33  ;;  %v3681_v33 = vld [vmem:[%s4251_s5 + $0xb0] sm:$0xff]  }
 0x202   :  { %2349 = vmatpush1.bf16.msra.mxu0 %v3653_v34  ;;  %v3682_v34 = vld [vmem:[%s4251_s5 + $0xb8] sm:$0xff]  }
 0x203   :  { %2350 = vmatprep.subr.bf16.mxu0 %v3658_v35 }
 0x206   :  { %2351 = vmatpush1.bf16.msra.mxu0 %v3656_v36 }
 0x209   :  { %2353 = vmatmul.mubr.bf16.vlgmr.msra.gmra.mrb[4].mxu0 %v4008_v47  ;;  %v3669_v47 = vld [vmem:[%s4251_s5 + $0x68] sm:$0xff]  }
 0x20a   :  { %3150 = vmatprep.subr.bf16.mxu1 %v3669_v47 }
 0x20b   :  { %3151 = vmatpush3.bf16.msra.mxu1 %v3670_v48 }
 0x20c   :  { %3152 = vmatprep.subr.bf16.mxu1 %v3671_v49 }
 0x20f   :  { %3153 = vmatpush3.bf16.msra.mxu1 %v3672_v50 }
 0x210   :  { %3154 = vmatprep.subr.bf16.mxu1 %v3673_v51 }
 0x213   :  { %3155 = vmatpush3.bf16.msra.mxu1 %v3674_v52 }
 0x214   :  { %3171 = vmatprep.subr.bf16.mxu1 %v3747_v53 }
 0x29c   :  { %v3112_v54 = vpop.f32.mrb[4].mxu1 }
 0x29d   :  { %v3113_v55 = vpop.f32.mrb[5].mxu1 }
 0x29e   :  { %v3114_v56 = vadd.f32 %v3113_v55, %v3112_v54  ;;  %v3115_v57 = vpop.f32.mrb[6].mxu1 }
 0x29f   :  { %v3116_v58 = vpop.f32.mrb[7].mxu1 }
 0x2a0   :  { %v3117_v59 = vadd.f32 %v3116_v58, %v3115_v57  ;;  %v2398_v0 = vadd.f32 %v3114_v56, %v1761_v61 }
 0x2a2   :  { %v2401_v4 = vadd.f32 %v3117_v59, %v1761_v61 }
 0x2bc   :  { %v3134_v62 = vpop.f32.mrb[8].mxu1 }
 0x2bd   :  { %v3135_v63 = vpop.f32.mrb[9].mxu1 }
 0x2be   :  { %v3136_v1 = vadd.f32 %v3135_v63, %v3134_v62  ;;  %v3137_v2 = vpop.f32.mrb[10].mxu1 }
 0x2bf   :  { %v3138_v3 = vpop.f32.mrb[11].mxu1 }
 0x2c0   :  { %v2439_v5 = vadd.f32 %v3136_v1, %v2398_v0  ;;  %v3139_v6 = vadd.f32 %v3138_v3, %v3137_v2 }
 0x2c2   :  { %v2442_v7 = vadd.f32 %v3139_v6, %v2401_v4  ;;  %3699 = vtanh.f32 %v2439_v5 }
 0x2c4   :  { %3701 = vtanh.f32 %v2442_v7 }
 0x2cc   :  { %v3700_v8 = vpop.eup %3699 }
 0x2ce   :  { %v3702_v9 = vpop.eup %3701 }
 0x2cf   :  { %v2453_v10 = vpack.c.bf16 %v3702_v9, %v3700_v8 }
 0x2dc   :  { %v2354_v12 = vpop.f32.mrb[4].mxu0 }
 0x2dd   :  { %v3199_v16 = vadd.f32 %v2354_v12, %v1753_v11  ;;  %v2356_v18 = vpop.f32.mrb[5].mxu0 }
 0x2de   :  { %v3200_v19 = vadd.f32 %v2356_v18, %v1757_v15  ;;  %v2358_v20 = vpop.f32.mrb[6].mxu0 }
 0x2df   :  { %3703 = vtanh.f32 %v3199_v16  ;;  %v3201_v21 = vadd.f32 %v2358_v20, %v1753_v11  ;;  %v2360_v22 = vpop.f32.mrb[7].mxu0 }
 0x2e0   :  { %3705 = vtanh.f32 %v3200_v19  ;;  %v3202_v23 = vadd.f32 %v2360_v22, %v1757_v15 }
 0x2e1   :  { %3707 = vtanh.f32 %v3201_v21 }
 0x2e2   :  { %3709 = vtanh.f32 %v3202_v23 }
 0x2e9   :  { %v3704_v24 = vpop.eup %3703 }
 0x2ea   :  { %v3706_v25 = vpop.eup %3705 }
 0x2eb   :  { %v3708_v26 = vpop.eup %3707 }
 0x2ec   :  { %v3710_v27 = vpop.eup %3709  ;;  %v2451_v14 = vpack.c.bf16 %v3708_v26, %v3704_v24 }
 0x2ed   :  { %v2452_v28 = vpack.c.bf16 %v3710_v27, %v3706_v25 }
 0x2ef   :  { %2685 = vmatprep.mubr.bf16.mxu1 %v2452_v28 }
 0x2f0   :  { %2686 = vmatmul.mubr.bf16.vlgmr.msra.gmra.mrb[12].mxu1 %v2451_v14 }
 0x2f1   :  { %3172 = vmatpush3.bf16.msra.mxu1 %v3675_v13  ;;  %3187 = vmatprep.mubr.msk.bf16.mxu1 %vm3748_vm1, %v3747_v53 }
 0x2f2   :  { %3173 = vmatprep.subr.bf16.mxu1 %v3747_v53 }
 0x2f5   :  { %3174 = vmatpush3.bf16.msra.mxu1 %v3676_v17 }
 0x2f6   :  { %3175 = vmatprep.subr.bf16.mxu1 %v3747_v53 }
 0x2f9   :  { %3176 = vmatpush3.bf16.msra.mxu1 %v3677_v29 }
 0x2fa   :  { %3177 = vmatprep.subr.bf16.mxu1 %v3747_v53 }
 0x2fd   :  { %3178 = vmatpush3.bf16.msra.mxu1 %v3678_v30 }
 0x2fe   :  { %3179 = vmatprep.subr.bf16.mxu1 %v3747_v53 }
 0x301   :  { %3180 = vmatpush3.bf16.msra.mxu1 %v3679_v31 }
 0x302   :  { %3181 = vmatprep.subr.bf16.mxu1 %v3747_v53 }
 0x305   :  { %3182 = vmatpush3.bf16.msra.mxu1 %v3680_v32 }
 0x306   :  { %3183 = vmatprep.subr.bf16.mxu1 %v3747_v53 }
 0x309   :  { %3184 = vmatpush3.bf16.msra.mxu1 %v3681_v33 }
 0x30a   :  { %3185 = vmatprep.subr.bf16.mxu1 %v3747_v53 }
 0x30d   :  { %3186 = vmatpush3.bf16.msra.mxu1 %v3682_v34 }
 0x310   :  { %3188 = vmatmul.mubr.bf16.vlgmr.msra.gmra.mrb[16].mxu1 %v2453_v10 }
 0x3c3   :  { %v3156_v35 = vpop.f32.mrb[12].mxu1 }
 0x3c4   :  { %v3157_v36 = vpop.f32.mrb[13].mxu1 }
 0x3c5   :  { %v3158_v37 = vadd.f32 %v3157_v36, %v3156_v35  ;;  %v3159_v38 = vpop.f32.mrb[14].mxu1 }
 0x3c6   :  { %v3160_v39 = vpop.f32.mrb[15].mxu1 }
 0x3c7   :  { %v3161_v40 = vadd.f32 %v3160_v39, %v3159_v38  ;;  %v2688_v42 = vadd.f32 %v3158_v37, %v3062_v41 }
 0x3c9   :  { %v2691_v46 = vadd.f32 %v3161_v40, %v3062_v41 }
 0x3e3   :  { %v2728_v43 = vpop.f32.mrb[16].mxu1 }
 0x3e4   :  { %v2729_v44 = vadd.f32 %v2728_v43, %v2688_v42  ;;  %v3189_v45 = vpop.f32.mrb[17].mxu1 }
 0x3e5   :  { %v2731_v47 = vpop.f32.mrb[18].mxu1 }
 0x3e6   :  { %v2732_v48 = vadd.f32 %v2731_v47, %v2691_v46  ;;  %v3190_v49 = vpop.f32.mrb[19].mxu1  ;;  %2735 = vmax.xlane.f32.xlu0 %v2729_v44 }
 0x3ea   :  { %2737 = vmax.xlane.f32.xlu0 %v2732_v48 }
 0x473   :  { %v2736_v50 = vpop.xlane.xlu0 %2735 }
 0x474   :  { %v2739_v51 = vsub.f32 %v2729_v44, %v2736_v50 }
 0x476   :  { %v2741_v52 = vmul.f32 1.442695, %v2739_v51 }
 0x477   :  { %v2738_v53 = vpop.xlane.xlu0 %2737 }
 0x478   :  { %3711 = vpow2.f32 %v2741_v52  ;;  %v2740_v54 = vsub.f32 %v2732_v48, %v2738_v53 }
 0x47a   :  { %v2743_v55 = vmul.f32 1.442695, %v2740_v54 }
 0x47c   :  { %3713 = vpow2.f32 %v2743_v55 }
 0x482   :  { %v3712_v56 = vpop.eup %3711 }
 0x483   :  { %2745 = vadd.xlane.f32.xlu1 %v3712_v56 }
 0x486   :  { %v3714_v57 = vpop.eup %3713 }
 0x487   :  { %2747 = vadd.xlane.f32.xlu1 %v3714_v57 }
 0x510   :  { %v2746_v58 = vpop.xlane.xlu1 %2745 }
 0x511   :  { %3715 = vrcp.f32 %v2746_v58 }
 0x514   :  { %v2748_v59 = vpop.xlane.xlu1 %2747 }
 0x515   :  { %3717 = vrcp.f32 %v2748_v59 }
 0x51b   :  { %v3716_v60 = vpop.eup %3715 }
 0x51c   :  { %v2751_v62 = vmul.f32 %v3716_v60, %v3712_v56 }
 0x51f   :  { %v3718_v61 = vpop.eup %3717 }
 0x520   :  { %v2752_v63 = vmul.f32 %v3718_v61, %v3714_v57 }
 0x522   :  { %v3094_v0 = vpack.c.bf16 %v2752_v63, %v2751_v62 }
 0x524   :  { %3095 = vst [vmem:[%s4253_s7] sm:$0xff] %v3094_v0  }
 0x525   :  { %2767 = vsyncpa [#allocation3], 1 }

</bundles_post_ra>
